<compile_context>
chip_gen: v7x
topology: tpu7x:2x2x1
jax: 0.10.0
libtpu: 0.0.40
codegen_flags: <defaults>
</compile_context>

<pallas_src>
import math
import functools

import jax
import jax.numpy as jnp
from jax import lax
from jax.experimental import pallas as pl
from jax.experimental.pallas import tpu as pltpu

_MiB = 1024 * 1024


# ------------------------------ hardware helpers ------------------------------
def _vmem_capacity_bytes():
    try:
        cap = int(pltpu.get_tpu_info().vmem_capacity_bytes)
        if cap > 0:
            return cap
    except Exception:
        pass
    return 64 * _MiB        # conservative fallback (v7x per-TC size)


def _is_v5e():
    try:
        kind = jax.devices()[0].device_kind.lower()
    except Exception:
        return False
    return ("v5 lite" in kind) or ("v5lite" in kind) or ("v5e" in kind)


def _mosaic_params(semantics, working_set_bytes, vmem_cap):
    # Enough headroom for the working set, never above 90% of physical VMEM.
    limit = int(max(32 * _MiB, 1.5 * working_set_bytes))
    limit = min(limit, int(0.9 * vmem_cap))
    limit = max(limit, 16 * _MiB)
    return pltpu.CompilerParams(dimension_semantics=semantics,
                                vmem_limit_bytes=limit)


def _pick_spatial_tile(s_all, c, vmem_cap, override=None):
    """Spatial tile for the GroupNorm stats pass (lane-dense, VMEM-aware)."""
    if override is not None:
        if s_all % override != 0:
            raise ValueError("spatial_tile must divide T*H*W")
        return override
    # Bigger tiles -> better DMA efficiency; keep smaller on 64 MiB (v7x) parts.
    cap_bytes = 4 * _MiB if vmem_cap <= 64 * _MiB else 12 * _MiB
    cap = max(128, cap_bytes // (4 * c))
    if s_all <= cap:
        return s_all
    best = None
    t = 128
    while t <= min(cap, s_all):
        if s_all % t == 0:
            best = t
        t += 128
    if best is None:
        raise ValueError(f"no 128-multiple spatial tile divides {s_all}; pad H*W")
    return best


def _pick_q_tile(s, vmem_cap, override=None):
    """Query tile: 256 on 256-wide MXUs (v6e/v7x), 128 on v5e, VMEM-aware."""
    if override is not None:
        if s % override != 0:
            raise ValueError("q_tile must divide H*W")
        return override
    target = 128 if _is_v5e() else 256
    budget = max(2 * _MiB, vmem_cap // 4)        # ~10 B/elem score working set
    while target > 128 and target * s * 10 > budget:
        target //= 2
    if s <= target:
        return s
    t = (target // 128) * 128
    while t >= 128:
        if s % t == 0:
            return t
        t -= 128
    raise ValueError(f"no 128-multiple q tile divides {s}; pad H*W")


def _pick_prep_chunk(s, override=None):
    """S-chunk for the per-frame K/V projection loop."""
    if override is not None:
        if s % override != 0 or override % 128 != 0:
            raise ValueError("prep_chunk must be a multiple of 128 dividing H*W")
        return override
    t = min(s, 512)
    t -= t % 128
    while t >= 128:
        if s % t == 0:
            return t
        t -= 128
    return s


# --------------------- GroupNorm scale/shift (stats) kernel --------------------
def gn_scale_shift_kernel(x_ref, grp_ref, gamma_ref, beta_ref, out_ref,
                          mean_acc, m2_acc, *, eps, tile_s, total_s):
    # x_ref block: (1, C, tile_s) slice of x viewed as (B, C, T*H*W).
    ti = pl.program_id(1)

    @pl.when(ti == 0)
    def _init():
        mean_acc[...] = jnp.zeros_like(mean_acc)
        m2_acc[...] = jnp.zeros_like(m2_acc)

    x = x_ref[0].astype(jnp.float32)                               # (C, tile_s)
    bmean = jnp.mean(x, axis=1, keepdims=True)                     # (C, 1)
    bm2 = jnp.sum(jnp.square(x - bmean), axis=1, keepdims=True)    # (C, 1)

    # Chan / Welford combine of equal-sized tiles (numerically safe one-pass).
    t = ti.astype(jnp.float32)
    delta = bmean - mean_acc[...]
    mean_acc[...] = mean_acc[...] + delta * (1.0 / (t + 1.0))
    m2_acc[...] = m2_acc[...] + bm2 + jnp.square(delta) * (float(tile_s) * t / (t + 1.0))

    @pl.when(ti == pl.num_programs(1) - 1)
    def _finalize():
        mean_c = mean_acc[...]                                     # (C, 1)
        # Per-group mean/variance broadcast back to channels via a tiny
        # group-averaging matmul (no in-kernel group reshapes).
        gmean_c = jnp.dot(grp_ref[...], mean_c,
                          preferred_element_type=jnp.float32)      # (C, 1)
        d = mean_c - gmean_c
        gvar_c = jnp.dot(grp_ref[...], m2_acc[...] + float(total_s) * d * d,
                         preferred_element_type=jnp.float32) * (1.0 / float(total_s))
        rstd_c = lax.rsqrt(gvar_c + eps)
        sc = rstd_c * gamma_ref[...]                               # (C, 1)
        sh = beta_ref[...] - gmean_c * sc
        out_ref[0, :, 0:1] = sc
        out_ref[0, :, 1:2] = sh


# ------- fused GroupNorm-apply + qkv + attention + proj_out + residual --------
def attn_frame_kernel(x_ref, ss_ref, wq_ref, bq_ref, wkv_ref, bkv_ref,
                      wp_ref, bp_ref, o_ref, k_scr, v_scr, *, q_tile, prep_chunk):
    # x_ref:   (1, C, S)   one frame, channels-first, resident across qi (1 buffer).
    # ss_ref:  (1, C, 2)   per-(batch, channel) GroupNorm scale / shift.
    # wq_ref:  (C, C)  bf16 = Wq^T * 1/sqrt(C)  (in, out).   bq_ref: (1, C) (scaled).
    # wkv_ref: (2C, C) bf16 = [Wk ; Wv]  (out, in).          bkv_ref: (2C, 1).
    # wp_ref:  (C, C)  bf16 = Wp  (out, in).                 bp_ref:  (C, 1).
    # k_scr:   (C, S)  bf16  K channels-first  -> scores are plain (tq,C)@(C,S).
    # v_scr:   (S, C)  bf16  V channels-last   -> PV is plain (tq,S)@(S,C).
    qi = pl.program_id(2)
    C = x_ref.shape[1]
    S = x_ref.shape[2]

    sc = ss_ref[0, :, 0:1]                                         # (C, 1)
    sh = ss_ref[0, :, 1:2]

    @pl.when(qi == 0)
    def _prepare_frame():
        # Normalize + fused K/V projection in S-chunks: bounds the f32
        # intermediates and never materializes the normalized frame.
        n_chunks = S // prep_chunk

        def body(ci, carry):
            off = pl.multiple_of(ci * prep_chunk, prep_chunk)
            xc = x_ref[0, :, pl.ds(off, prep_chunk)].astype(jnp.float32)   # (C, chunk)
            xn = (xc * sc + sh).astype(jnp.bfloat16)                       # (C, chunk)
            kv = jnp.dot(wkv_ref[...], xn,
                         preferred_element_type=jnp.float32) + bkv_ref[...]  # (2C, chunk)
            k_scr[:, pl.ds(off, prep_chunk)] = kv[:C, :].astype(jnp.bfloat16)
            v_scr[pl.ds(off, prep_chunk), :] = kv[C:, :].T.astype(jnp.bfloat16)
            return carry

        lax.fori_loop(0, n_chunks, body, 0, unroll=False)

    row0 = pl.multiple_of(qi * q_tile, q_tile)
    x_res = x_ref[0, :, pl.ds(row0, q_tile)].astype(jnp.float32)   # (C, tq) raw (residual)
    xq = ((x_res * sc + sh).T).astype(jnp.bfloat16)                # (tq, C) normalized q rows
    q = (jnp.dot(xq, wq_ref[...], preferred_element_type=jnp.float32)
         + bq_ref[...]).astype(jnp.bfloat16)                       # (tq, C), 1/sqrt(C) folded

    s = jnp.dot(q, k_scr[...], preferred_element_type=jnp.float32)  # (tq, S) plain MXU dot
    m = jnp.max(s, axis=-1, keepdims=True)
    p = jnp.exp(s - m)                                              # f32 (tq, S)
    l = jnp.sum(p, axis=-1, keepdims=True)                          # (tq, 1)
    attn = jnp.dot(p.astype(jnp.bfloat16), v_scr[...],
                   preferred_element_type=jnp.float32)              # (tq, C) plain MXU dot
    attn = attn * pl.reciprocal(l, approx=False)                    # exact softmax denom
    attn_cf = attn.T.astype(jnp.bfloat16)                           # (C, tq) small transpose

    proj = jnp.dot(wp_ref[...], attn_cf,
                   preferred_element_type=jnp.float32)              # (C, tq) channels-first
    o_ref[0] = (x_res + proj + bp_ref[...]).astype(o_ref.dtype)


# ---------------------------------- wrapper -----------------------------------
def wf_causal_conv3d_attn_block(x, params, *, num_groups, eps=1e-6,
                                kernel_size=1, stride=1,
                                spatial_tile=None, q_tile=None, prep_chunk=None):
    if kernel_size != 1 or stride != 1:
        raise NotImplementedError(
            "only WfCausalConv3d(kernel_size=1, stride=1) (pure channel projection) "
            "is supported")
    B, C, T, H, W = x.shape
    G = num_groups
    if C % G != 0:
        raise ValueError("num_groups must divide channels")
    S = H * W
    S_all = T * S
    if S % 128 != 0:
        # TODO(synk): pad H*W up to a multiple of 128 to support arbitrary frame sizes.
        raise ValueError("H*W must be a multiple of 128")

    vmem_cap = _vmem_capacity_bytes()
    x3 = x.reshape(B, C, S_all)                 # free reshape, no HBM transpose

    # ---- kernel 1: per-(batch, channel) GroupNorm scale & shift ----
    tile_s = _pick_spatial_tile(S_all, C, vmem_cap, spatial_tile)
    n_tiles = S_all // tile_s
    gid = jnp.arange(C, dtype=jnp.int32) // (C // G)
    grp_avg = (gid[:, None] == gid[None, :]).astype(jnp.float32) / float(C // G)  # (C, C)
    gamma_c = params["gamma"].reshape(C, 1).astype(jnp.float32)
    beta_c = params["beta"].reshape(C, 1).astype(jnp.float32)

    gn_est = 2 * C * tile_s * 4 + C * C * 4 + 16 * C * 4
    ss = pl.pallas_call(
        functools.partial(gn_scale_shift_kernel, eps=eps, tile_s=tile_s, total_s=S_all),
        out_shape=jax.ShapeDtypeStruct((B, C, 2), jnp.float32),
        grid=(B, n_tiles),
        in_specs=[
            pl.BlockSpec((1, C, tile_s), lambda b, s: (b, 0, s)),
            pl.BlockSpec((C, C), lambda b, s: (0, 0)),
            pl.BlockSpec((C, 1), lambda b, s: (0, 0)),
            pl.BlockSpec((C, 1), lambda b, s: (0, 0)),
        ],
        out_specs=pl.BlockSpec((1, C, 2), lambda b, s: (b, 0, 0)),
        scratch_shapes=[pltpu.VMEM((C, 1), jnp.float32),
                        pltpu.VMEM((C, 1), jnp.float32)],
        compiler_params=_mosaic_params(("parallel", "arbitrary"), gn_est, vmem_cap),
    )(x3, grp_avg, gamma_c, beta_c)

    # ---- host-side weight packing (pre-transposed / fused, bf16, scale folded) ----
    cd = jnp.bfloat16
    scale = 1.0 / math.sqrt(C)
    wq_t = (params["wq"].T * scale).astype(cd)                         # (C, C)  (in, out)
    bq_r = (params["bq"].reshape(1, C) * scale).astype(jnp.float32)    # (1, C)
    wkv = jnp.concatenate([params["wk"], params["wv"]], axis=0).astype(cd)          # (2C, C)
    bkv = jnp.concatenate([params["bk"], params["bv"]],
                          axis=0).reshape(2 * C, 1).astype(jnp.float32)              # (2C, 1)
    wp_c = params["wp"].astype(cd)                                     # (C, C)  (out, in)
    bp_r = params["bp"].reshape(C, 1).astype(jnp.float32)              # (C, 1)

    # ---- kernel 2: fused norm + qkv + attention + proj_out + residual ----
    tq = _pick_q_tile(S, vmem_cap, q_tile)
    nq = S // tq
    chunk = _pick_prep_chunk(S, prep_chunk)

    att_est = (C * S * 4              # resident raw frame (single-buffered)
               + 2 * C * S * 2        # K + V bf16 scratch
               + 4 * C * C * 2        # weights (single-buffered)
               + tq * S * 10          # f32 scores + f32/bf16 probs
               + 2 * C * tq * 4       # double-buffered output block
               + 4 * C * chunk * 4)   # prep-chunk intermediates

    def out_index(b, t, qi):
        return (b, 0, t * nq + qi)

    out3 = pl.pallas_call(
        functools.partial(attn_frame_kernel, q_tile=tq, prep_chunk=chunk),
        out_shape=jax.ShapeDtypeStruct((B, C, S_all), x.dtype),
        grid=(B, T, nq),
        in_specs=[
            # Full frame, resident across qi; single-buffered (its block index only
            # changes with t, so double-buffering only wasted C*S*4 bytes of VMEM).
            # TODO(synk): on v5e the per-frame refetch is briefly exposed; a manual
            # pl.ANY + make_async_copy prefetch of frame t+1 would hide it.
            pl.BlockSpec((1, C, S), lambda b, t, qi: (b, 0, t),
                         pipeline_mode=pl.Buffered(1)),
            # Constant-index inputs: single buffer (they never change across grid).
            pl.BlockSpec((1, C, 2), lambda b, t, qi: (b, 0, 0),
                         pipeline_mode=pl.Buffered(1)),
            pl.BlockSpec((C, C), lambda b, t, qi: (0, 0),
                         pipeline_mode=pl.Buffered(1)),
            pl.BlockSpec((1, C), lambda b, t, qi: (0, 0),
                         pipeline_mode=pl.Buffered(1)),
            pl.BlockSpec((2 * C, C), lambda b, t, qi: (0, 0),
                         pipeline_mode=pl.Buffered(1)),
            pl.BlockSpec((2 * C, 1), lambda b, t, qi: (0, 0),
                         pipeline_mode=pl.Buffered(1)),
            pl.BlockSpec((C, C), lambda b, t, qi: (0, 0),
                         pipeline_mode=pl.Buffered(1)),
            pl.BlockSpec((C, 1), lambda b, t, qi: (0, 0),
                         pipeline_mode=pl.Buffered(1)),
        ],
        out_specs=pl.BlockSpec((1, C, tq), out_index),
        scratch_shapes=[pltpu.VMEM((C, S), jnp.bfloat16),              # K (channels-first)
                        pltpu.VMEM((S, C), jnp.bfloat16)],             # V (channels-last)
        compiler_params=_mosaic_params(("parallel", "parallel", "arbitrary"),
                                       att_est, vmem_cap),
    )(x3, ss, wq_t, bq_r, wkv, bkv, wp_c, bp_r)
    # TODO(synk): when B*T == 1 (single-frame decode) a core-parallel leading axis
    # splitting q-tiles across the two v7x TensorCores (duplicating the cheap K/V
    # prep) would recover the idle core.

    return out3.reshape(B, C, T, H, W)          # free reshape back to NCTHW


# ------------------------- pure-JAX reference (check) ------------------------
def reference(x, params, num_groups, eps=1e-6):
    B, C, T, H, W = x.shape
    xg = x.reshape(B, num_groups, -1)
    mean = xg.mean(axis=-1, keepdims=True)
    var = ((xg - mean) ** 2).mean(axis=-1, keepdims=True)
    xn = ((xg - mean) / jnp.sqrt(var + eps)).reshape(B, C, T, H, W)
    xn = xn * params["gamma"].reshape(1, C, 1, 1, 1) + params["beta"].reshape(1, C, 1, 1, 1)

    def proj(a, w, b):
        return jnp.einsum("bcthw,oc->bothw", a, w) + b.reshape(1, C, 1, 1, 1)

    q = proj(xn, params["wq"], params["bq"])
    k = proj(xn, params["wk"], params["bk"])
    v = proj(xn, params["wv"], params["bv"])

    def to_bsh(a):
        return a.transpose(0, 2, 3, 4, 1).reshape(B * T, H * W, C)

    q, k, v = to_bsh(q), to_bsh(k), to_bsh(v)
    s = jnp.einsum("bsc,btc->bst", q, k) / math.sqrt(C)
    p = jax.nn.softmax(s, axis=-1)
    o = jnp.einsum("bst,btc->bsc", p, v)
    o = o.reshape(B, T, H, W, C).transpose(0, 4, 1, 2, 3)
    o = proj(o, params["wp"], params["bp"])
    return x + o


if __name__ == "__main__":
    B, C, T, H, W = 2, 8, 3, 16, 16        # S = H*W = 256 (multiple of 128)
    num_groups = 2

    key = jax.random.PRNGKey(0)
    ks = jax.random.split(key, 11)
    x = jax.random.normal(ks[0], (B, C, T, H, W), jnp.float32)

    def w_init(k):
        return jax.random.normal(k, (C, C), jnp.float32) * (1.0 / math.sqrt(C))

    def b_init(k):
        return jax.random.normal(k, (C,), jnp.float32) * 0.1

    params = {
        "gamma": 1.0 + 0.1 * jax.random.normal(ks[1], (C,), jnp.float32),
        "beta": 0.1 * jax.random.normal(ks[2], (C,), jnp.float32),
        "wq": w_init(ks[3]), "bq": b_init(ks[4]),
        "wk": w_init(ks[5]), "bk": b_init(ks[6]),
        "wv": w_init(ks[7]), "bv": b_init(ks[8]),
        "wp": w_init(ks[9]), "bp": b_init(ks[10]),
    }

    # spatial_tile=128 exercises the multi-tile GroupNorm accumulation,
    # q_tile=128 the query-tiled attention (nq = 2), prep_chunk=128 the chunked
    # K/V prep loop (2 chunks per frame).
    fn = jax.jit(functools.partial(wf_causal_conv3d_attn_block,
                                   num_groups=num_groups, eps=1e-6,
                                   spatial_tile=128, q_tile=128, prep_chunk=128))
    out = jax.block_until_ready(fn(x, params))

    ref = reference(x, params, num_groups, eps=1e-6)
    assert out.shape == x.shape and out.dtype == x.dtype
    # bf16 MXU operands (weights + activations) -> compare at bf16-level tolerance.
    err = float(jnp.max(jnp.abs(out - ref)))
    assert jnp.allclose(out, ref, atol=7e-2, rtol=7e-2), err
    print("KERNEL_OK")
</pallas_src>

<mosaic_0001>
module attributes {stable_mosaic.version = 11 : i64} {
  func.func @gn_scale_shift_kernel(%arg0: i32, %arg1: i32, %arg2: memref<1x8x128xf32, #tpu.memory_space<vmem>>, %arg3: memref<8x8xf32, #tpu.memory_space<vmem>>, %arg4: memref<8x1xf32, #tpu.memory_space<vmem>>, %arg5: memref<8x1xf32, #tpu.memory_space<vmem>>, %arg6: memref<1x8x2xf32, #tpu.memory_space<vmem>>, %arg7: memref<8x1xf32, #tpu.memory_space<vmem>>, %arg8: memref<8x1xf32, #tpu.memory_space<vmem>>) attributes {dimension_semantics = [#tpu.dimension_semantics<parallel>, #tpu.dimension_semantics<arbitrary>], iteration_bounds = array<i64: 2, 6>, scalar_prefetch = 0 : i64, scratch_operands = 2 : i64, tpu.core_type = #tpu.core_type<tc>, window_params = [{transform_indices = @transform_0, window_bounds = array<i64: 1, 8, 128>}, {pipeline_mode = #tpu.pipeline_mode<synchronous>, transform_indices = @transform_1, window_bounds = array<i64: 8, 8>}, {pipeline_mode = #tpu.pipeline_mode<synchronous>, transform_indices = @transform_2, window_bounds = array<i64: 8, 1>}, {pipeline_mode = #tpu.pipeline_mode<synchronous>, transform_indices = @transform_3, window_bounds = array<i64: 8, 1>}, {transform_indices = @transform_4, window_bounds = array<i64: 1, 8, 2>}]} {
    %c0_i32 = arith.constant 0 : i32
    %0 = arith.cmpi eq, %arg1, %c0_i32 : i32
    %1 = arith.extui %0 : i1 to i32
    %c0_i32_0 = arith.constant 0 : i32
    %2 = arith.cmpi ne, %1, %c0_i32_0 : i32
    scf.if %2 {
      %cst_20 = arith.constant 0.000000e+00 : f32
      %37 = vector.broadcast %cst_20 : f32 to vector<8x1xf32>
      %c0_21 = arith.constant 0 : index
      %c0_22 = arith.constant 0 : index
      %38 = vector.load %arg7[%c0_21, %c0_22] : memref<8x1xf32, #tpu.memory_space<vmem>>, vector<8x1xf32>
      tpu.vector_store %arg7[%c0_21, %c0_22], %37 {strides = array<i32>} : memref<8x1xf32, #tpu.memory_space<vmem>>, vector<8x1xf32>,
      %cst_23 = arith.constant 0.000000e+00 : f32
      %39 = vector.broadcast %cst_23 : f32 to vector<8x1xf32>
      %c0_24 = arith.constant 0 : index
      %c0_25 = arith.constant 0 : index
      %40 = vector.load %arg8[%c0_24, %c0_25] : memref<8x1xf32, #tpu.memory_space<vmem>>, vector<8x1xf32>
      tpu.vector_store %arg8[%c0_24, %c0_25], %39 {strides = array<i32>} : memref<8x1xf32, #tpu.memory_space<vmem>>, vector<8x1xf32>,
    } else {
    }
    %c0 = arith.constant 0 : index
    %c0_1 = arith.constant 0 : index
    %c0_2 = arith.constant 0 : index
    %3 = vector.load %arg2[%c0, %c0_1, %c0_2] : memref<1x8x128xf32, #tpu.memory_space<vmem>>, vector<1x8x128xf32>
    %4 = vector.shape_cast %3 : vector<1x8x128xf32> to vector<8x128xf32>
    %cst = arith.constant dense<0.000000e+00> : vector<8xf32>
    %5 = vector.multi_reduction <add>, %4, %cst [1] : vector<8x128xf32> to vector<8xf32>
    %6 = vector.shape_cast %5 : vector<8xf32> to vector<8x1xf32>
    %cst_3 = arith.constant 1.280000e+02 : f32
    %7 = vector.broadcast %cst_3 : f32 to vector<8x1xf32>
    %8 = arith.divf %6, %7 : vector<8x1xf32>
    %9 = vector.broadcast %8 : vector<8x1xf32> to vector<8x128xf32>
    %10 = arith.subf %4, %9 : vector<8x128xf32>
    %11 = arith.mulf %10, %10 : vector<8x128xf32>
    %cst_4 = arith.constant dense<0.000000e+00> : vector<8xf32>
    %12 = vector.multi_reduction <add>, %11, %cst_4 [1] : vector<8x128xf32> to vector<8xf32>
    %13 = vector.shape_cast %12 : vector<8xf32> to vector<8x1xf32>
    %14 = arith.sitofp %arg1 : i32 to f32
    %c0_5 = arith.constant 0 : index
    %c0_6 = arith.constant 0 : index
    %15 = vector.load %arg7[%c0_5, %c0_6] : memref<8x1xf32, #tpu.memory_space<vmem>>, vector<8x1xf32>
    %16 = arith.subf %8, %15 : vector<8x1xf32>
    %c0_7 = arith.constant 0 : index
    %c0_8 = arith.constant 0 : index
    %17 = vector.load %arg7[%c0_7, %c0_8] : memref<8x1xf32, #tpu.memory_space<vmem>>, vector<8x1xf32>
    %cst_9 = arith.constant 1.000000e+00 : f32
    %18 = arith.addf %14, %cst_9 : f32
    %cst_10 = arith.constant 1.000000e+00 : f32
    %19 = arith.divf %cst_10, %18 : f32
    %20 = vector.broadcast %19 : f32 to vector<8x1xf32>
    %21 = arith.mulf %16, %20 : vector<8x1xf32>
    %22 = arith.addf %17, %21 : vector<8x1xf32>
    %c0_11 = arith.constant 0 : index
    %c0_12 = arith.constant 0 : index
    %23 = vector.load %arg7[%c0_11, %c0_12] : memref<8x1xf32, #tpu.memory_space<vmem>>, vector<8x1xf32>
    tpu.vector_store %arg7[%c0_11, %c0_12], %22 {strides = array<i32>} : memref<8x1xf32, #tpu.memory_space<vmem>>, vector<8x1xf32>,
    %c0_13 = arith.constant 0 : index
    %c0_14 = arith.constant 0 : index
    %24 = vector.load %arg8[%c0_13, %c0_14] : memref<8x1xf32, #tpu.memory_space<vmem>>, vector<8x1xf32>
    %25 = arith.addf %24, %13 : vector<8x1xf32>
    %26 = arith.mulf %16, %16 : vector<8x1xf32>
    %cst_15 = arith.constant 1.280000e+02 : f32
    %27 = arith.mulf %cst_15, %14 : f32
    %cst_16 = arith.constant 1.000000e+00 : f32
    %28 = arith.addf %14, %cst_16 : f32
    %29 = arith.divf %27, %28 : f32
    %30 = vector.broadcast %29 : f32 to vector<8x1xf32>
    %31 = arith.mulf %26, %30 : vector<8x1xf32>
    %32 = arith.addf %25, %31 : vector<8x1xf32>
    %c0_17 = arith.constant 0 : index
    %c0_18 = arith.constant 0 : index
    %33 = vector.load %arg8[%c0_17, %c0_18] : memref<8x1xf32, #tpu.memory_space<vmem>>, vector<8x1xf32>
    tpu.vector_store %arg8[%c0_17, %c0_18], %32 {strides = array<i32>} : memref<8x1xf32, #tpu.memory_space<vmem>>, vector<8x1xf32>,
    %c5_i32 = arith.constant 5 : i32
    %34 = arith.cmpi eq, %arg1, %c5_i32 : i32
    %35 = arith.extui %34 : i1 to i32
    %c0_i32_19 = arith.constant 0 : i32
    %36 = arith.cmpi ne, %35, %c0_i32_19 : i32
    scf.if %36 {
      %c0_20 = arith.constant 0 : index
      %c0_21 = arith.constant 0 : index
      %37 = vector.load %arg7[%c0_20, %c0_21] : memref<8x1xf32, #tpu.memory_space<vmem>>, vector<8x1xf32>
      %c0_22 = arith.constant 0 : index
      %c0_23 = arith.constant 0 : index
      %38 = vector.load %arg3[%c0_22, %c0_23] : memref<8x8xf32, #tpu.memory_space<vmem>>, vector<8x8xf32>
      %cst_24 = arith.constant dense<0.000000e+00> : vector<8x1xf32>
      %39 = tpu.matmul %38, %37, %cst_24 {dimension_numbers = #tpu.dot_dimension_numbers<[1], [0], [0], [1], [0, 0, 1, 1], [], []>} : vector<8x8xf32>, vector<8x1xf32>, vector<8x1xf32> -> vector<8x1xf32>
      %40 = arith.subf %37, %39 : vector<8x1xf32>
      %c0_25 = arith.constant 0 : index
      %c0_26 = arith.constant 0 : index
      %41 = vector.load %arg3[%c0_25, %c0_26] : memref<8x8xf32, #tpu.memory_space<vmem>>, vector<8x8xf32>
      %c0_27 = arith.constant 0 : index
      %c0_28 = arith.constant 0 : index
      %42 = vector.load %arg8[%c0_27, %c0_28] : memref<8x1xf32, #tpu.memory_space<vmem>>, vector<8x1xf32>
      %cst_29 = arith.constant 7.680000e+02 : f32
      %43 = vector.broadcast %cst_29 : f32 to vector<8x1xf32>
      %44 = arith.mulf %43, %40 : vector<8x1xf32>
      %45 = arith.mulf %44, %40 : vector<8x1xf32>
      %46 = arith.addf %42, %45 : vector<8x1xf32>
      %cst_30 = arith.constant dense<0.000000e+00> : vector<8x1xf32>
      %47 = tpu.matmul %41, %46, %cst_30 {dimension_numbers = #tpu.dot_dimension_numbers<[1], [0], [0], [1], [0, 0, 1, 1], [], []>} : vector<8x8xf32>, vector<8x1xf32>, vector<8x1xf32> -> vector<8x1xf32>
      %cst_31 = arith.constant 0.00130208337 : f32
      %48 = vector.broadcast %cst_31 : f32 to vector<8x1xf32>
      %49 = arith.mulf %47, %48 : vector<8x1xf32>
      %cst_32 = arith.constant 9.99999997E-7 : f32
      %50 = vector.broadcast %cst_32 : f32 to vector<8x1xf32>
      %51 = arith.addf %49, %50 : vector<8x1xf32>
      %52 = math.rsqrt %51 : vector<8x1xf32>
      %c0_33 = arith.constant 0 : index
      %c0_34 = arith.constant 0 : index
      %53 = vector.load %arg4[%c0_33, %c0_34] : memref<8x1xf32, #tpu.memory_space<vmem>>, vector<8x1xf32>
      %54 = arith.mulf %52, %53 : vector<8x1xf32>
      %c0_35 = arith.constant 0 : index
      %c0_36 = arith.constant 0 : index
      %55 = vector.load %arg5[%c0_35, %c0_36] : memref<8x1xf32, #tpu.memory_space<vmem>>, vector<8x1xf32>
      %56 = arith.mulf %39, %54 : vector<8x1xf32>
      %57 = arith.subf %55, %56 : vector<8x1xf32>
      %c0_37 = arith.constant 0 : index
      %c0_38 = arith.constant 0 : index
      %c0_39 = arith.constant 0 : index
      %58 = vector.load %arg6[%c0_37, %c0_38, %c0_39] : memref<1x8x2xf32, #tpu.memory_space<vmem>>, vector<1x8x1xf32>
      %59 = vector.shape_cast %58 : vector<1x8x1xf32> to vector<8x1xf32>
      %60 = vector.shape_cast %54 : vector<8x1xf32> to vector<1x8x1xf32>
      tpu.vector_store %arg6[%c0_37, %c0_38, %c0_39], %60 {strides = array<i32>} : memref<1x8x2xf32, #tpu.memory_space<vmem>>, vector<1x8x1xf32>,
      %c0_40 = arith.constant 0 : index
      %c0_41 = arith.constant 0 : index
      %c1 = arith.constant 1 : index
      %61 = vector.load %arg6[%c0_40, %c0_41, %c1] : memref<1x8x2xf32, #tpu.memory_space<vmem>>, vector<1x8x1xf32>
      %62 = vector.shape_cast %61 : vector<1x8x1xf32> to vector<8x1xf32>
      %63 = vector.shape_cast %57 : vector<8x1xf32> to vector<1x8x1xf32>
      tpu.vector_store %arg6[%c0_40, %c0_41, %c1], %63 {strides = array<i32>} : memref<1x8x2xf32, #tpu.memory_space<vmem>>, vector<1x8x1xf32>,
    } else {
    }
    return
  }
  func.func @transform_0(%arg0: i32, %arg1: i32) -> (i32, i32, i32) {
    %c0_i32 = arith.constant 0 : i32
    %c0_i32_0 = arith.constant 0 : i32
    return %arg0, %c0_i32, %arg1 : i32, i32, i32
  }
  func.func @transform_1(%arg0: i32, %arg1: i32) -> (i32, i32) {
    %c0_i32 = arith.constant 0 : i32
    %c0_i32_0 = arith.constant 0 : i32
    %c0_i32_1 = arith.constant 0 : i32
    return %c0_i32, %c0_i32_0 : i32, i32
  }
  func.func @transform_2(%arg0: i32, %arg1: i32) -> (i32, i32) {
    %c0_i32 = arith.constant 0 : i32
    %c0_i32_0 = arith.constant 0 : i32
    %c0_i32_1 = arith.constant 0 : i32
    return %c0_i32, %c0_i32_0 : i32, i32
  }
  func.func @transform_3(%arg0: i32, %arg1: i32) -> (i32, i32) {
    %c0_i32 = arith.constant 0 : i32
    %c0_i32_0 = arith.constant 0 : i32
    %c0_i32_1 = arith.constant 0 : i32
    return %c0_i32, %c0_i32_0 : i32, i32
  }
  func.func @transform_4(%arg0: i32, %arg1: i32) -> (i32, i32, i32) {
    %c0_i32 = arith.constant 0 : i32
    %c0_i32_0 = arith.constant 0 : i32
    %c0_i32_1 = arith.constant 0 : i32
    return %arg0, %c0_i32, %c0_i32_0 : i32, i32, i32
  }
}

module attributes {stable_mosaic.version = 11 : i64} {
  func.func @attn_frame_kernel(%arg0: i32, %arg1: i32, %arg2: i32, %arg3: memref<1x8x256xf32, #tpu.memory_space<vmem>>, %arg4: memref<1x8x2xf32, #tpu.memory_space<vmem>>, %arg5: memref<8x8xbf16, #tpu.memory_space<vmem>>, %arg6: memref<1x8xf32, #tpu.memory_space<vmem>>, %arg7: memref<16x8xbf16, #tpu.memory_space<vmem>>, %arg8: memref<16x1xf32, #tpu.memory_space<vmem>>, %arg9: memref<8x8xbf16, #tpu.memory_space<vmem>>, %arg10: memref<8x1xf32, #tpu.memory_space<vmem>>, %arg11: memref<1x8x128xf32, #tpu.memory_space<vmem>>, %arg12: memref<8x256xbf16, #tpu.memory_space<vmem>>, %arg13: memref<256x8xbf16, #tpu.memory_space<vmem>>) attributes {dimension_semantics = [#tpu.dimension_semantics<parallel>, #tpu.dimension_semantics<parallel>, #tpu.dimension_semantics<arbitrary>], iteration_bounds = array<i64: 2, 3, 2>, scalar_prefetch = 0 : i64, scratch_operands = 2 : i64, tpu.core_type = #tpu.core_type<tc>, window_params = [{pipeline_mode = #tpu.pipeline_mode<synchronous>, transform_indices = @transform_0, window_bounds = array<i64: 1, 8, 256>}, {pipeline_mode = #tpu.pipeline_mode<synchronous>, transform_indices = @transform_1, window_bounds = array<i64: 1, 8, 2>}, {pipeline_mode = #tpu.pipeline_mode<synchronous>, transform_indices = @transform_2, window_bounds = array<i64: 8, 8>}, {pipeline_mode = #tpu.pipeline_mode<synchronous>, transform_indices = @transform_3, window_bounds = array<i64: 1, 8>}, {pipeline_mode = #tpu.pipeline_mode<synchronous>, transform_indices = @transform_4, window_bounds = array<i64: 16, 8>}, {pipeline_mode = #tpu.pipeline_mode<synchronous>, transform_indices = @transform_5, window_bounds = array<i64: 16, 1>}, {pipeline_mode = #tpu.pipeline_mode<synchronous>, transform_indices = @transform_6, window_bounds = array<i64: 8, 8>}, {pipeline_mode = #tpu.pipeline_mode<synchronous>, transform_indices = @transform_7, window_bounds = array<i64: 8, 1>}, {transform_indices = @transform_8, window_bounds = array<i64: 1, 8, 128>}]} {
    %c0 = arith.constant 0 : index
    %c0_0 = arith.constant 0 : index
    %c0_1 = arith.constant 0 : index
    %0 = vector.load %arg4[%c0, %c0_0, %c0_1] : memref<1x8x2xf32, #tpu.memory_space<vmem>>, vector<1x8x1xf32>
    %1 = vector.shape_cast %0 : vector<1x8x1xf32> to vector<8x1xf32>
    %c0_2 = arith.constant 0 : index
    %c0_3 = arith.constant 0 : index
    %c1 = arith.constant 1 : index
    %2 = vector.load %arg4[%c0_2, %c0_3, %c1] : memref<1x8x2xf32, #tpu.memory_space<vmem>>, vector<1x8x1xf32>
    %3 = vector.shape_cast %2 : vector<1x8x1xf32> to vector<8x1xf32>
    %c0_i32 = arith.constant 0 : i32
    %4 = arith.cmpi eq, %arg2, %c0_i32 : i32
    %5 = arith.extui %4 : i1 to i32
    %c0_i32_4 = arith.constant 0 : i32
    %6 = arith.cmpi ne, %5, %c0_i32_4 : i32
    scf.if %6 {
      %c0_i32_27 = arith.constant 0 : i32
      %c2_i32 = arith.constant 2 : i32
      %50 = arith.addi %c0_i32_27, %c2_i32 : i32
      %c1_i32 = arith.constant 1 : i32
      scf.for %arg14 = %c0_i32_27 to %50 step %c1_i32  : i32 {
        %c128_i32_29 = arith.constant 128 : i32
        %51 = arith.muli %arg14, %c128_i32_29 : i32
        %52 = tpu.assume_multiple %51, 128 : i32
        %c0_30 = arith.constant 0 : index
        %c0_31 = arith.constant 0 : index
        %53 = arith.index_cast %52 : i32 to index
        %54 = vector.load %arg3[%c0_30, %c0_31, %53] : memref<1x8x256xf32, #tpu.memory_space<vmem>>, vector<1x8x128xf32>
        %55 = vector.shape_cast %54 : vector<1x8x128xf32> to vector<8x128xf32>
        %56 = vector.broadcast %1 : vector<8x1xf32> to vector<8x128xf32>
        %57 = arith.mulf %55, %56 : vector<8x128xf32>
        %58 = vector.broadcast %3 : vector<8x1xf32> to vector<8x128xf32>
        %59 = arith.addf %57, %58 : vector<8x128xf32>
        %60 = arith.truncf %59 : vector<8x128xf32> to vector<8x128xbf16>
        %c0_32 = arith.constant 0 : index
        %c0_33 = arith.constant 0 : index
        %61 = vector.load %arg7[%c0_32, %c0_33] : memref<16x8xbf16, #tpu.memory_space<vmem>>, vector<16x8xbf16>
        %cst_34 = arith.constant dense<0.000000e+00> : vector<16x128xf32>
        %62 = tpu.matmul %61, %60, %cst_34 {dimension_numbers = #tpu.dot_dimension_numbers<[1], [0], [0], [1], [0, 0, 1, 1], [], []>} : vector<16x8xbf16>, vector<8x128xbf16>, vector<16x128xf32> -> vector<16x128xf32>
        %c0_35 = arith.constant 0 : index
        %c0_36 = arith.constant 0 : index
        %63 = vector.load %arg8[%c0_35, %c0_36] : memref<16x1xf32, #tpu.memory_space<vmem>>, vector<16x1xf32>
        %64 = vector.broadcast %63 : vector<16x1xf32> to vector<16x128xf32>
        %65 = arith.addf %62, %64 : vector<16x128xf32>
        %66 = vector.extract_strided_slice %65 {offsets = [0, 0], sizes = [8, 128], strides = [1, 1]} : vector<16x128xf32> to vector<8x128xf32>
        %67 = arith.truncf %66 : vector<8x128xf32> to vector<8x128xbf16>
        %c0_37 = arith.constant 0 : index
        %68 = arith.index_cast %52 : i32 to index
        %69 = vector.load %arg12[%c0_37, %68] : memref<8x256xbf16, #tpu.memory_space<vmem>>, vector<8x128xbf16>
        tpu.vector_store %arg12[%c0_37, %68], %67 {strides = array<i32>} : memref<8x256xbf16, #tpu.memory_space<vmem>>, vector<8x128xbf16>,
        %70 = vector.extract_strided_slice %65 {offsets = [8, 0], sizes = [8, 128], strides = [1, 1]} : vector<16x128xf32> to vector<8x128xf32>
        %71 = tpu.transpose %70, [1, 0] : vector<8x128xf32> -> vector<128x8xf32>
        %72 = arith.truncf %71 : vector<128x8xf32> to vector<128x8xbf16>
        %73 = arith.index_cast %52 : i32 to index
        %c0_38 = arith.constant 0 : index
        %74 = vector.load %arg13[%73, %c0_38] : memref<256x8xbf16, #tpu.memory_space<vmem>>, vector<128x8xbf16>
        tpu.vector_store %arg13[%73, %c0_38], %72 {strides = array<i32>} : memref<256x8xbf16, #tpu.memory_space<vmem>>, vector<128x8xbf16>,
      }
      %c2_i32_28 = arith.constant 2 : i32
    } else {
    }
    %c128_i32 = arith.constant 128 : i32
    %7 = arith.muli %arg2, %c128_i32 : i32
    %8 = tpu.assume_multiple %7, 128 : i32
    %c0_5 = arith.constant 0 : index
    %c0_6 = arith.constant 0 : index
    %9 = arith.index_cast %8 : i32 to index
    %10 = vector.load %arg3[%c0_5, %c0_6, %9] : memref<1x8x256xf32, #tpu.memory_space<vmem>>, vector<1x8x128xf32>
    %11 = vector.shape_cast %10 : vector<1x8x128xf32> to vector<8x128xf32>
    %12 = vector.broadcast %1 : vector<8x1xf32> to vector<8x128xf32>
    %13 = arith.mulf %11, %12 : vector<8x128xf32>
    %14 = vector.broadcast %3 : vector<8x1xf32> to vector<8x128xf32>
    %15 = arith.addf %13, %14 : vector<8x128xf32>
    %16 = tpu.transpose %15, [1, 0] : vector<8x128xf32> -> vector<128x8xf32>
    %17 = arith.truncf %16 : vector<128x8xf32> to vector<128x8xbf16>
    %c0_7 = arith.constant 0 : index
    %c0_8 = arith.constant 0 : index
    %18 = vector.load %arg5[%c0_7, %c0_8] : memref<8x8xbf16, #tpu.memory_space<vmem>>, vector<8x8xbf16>
    %cst = arith.constant dense<0.000000e+00> : vector<128x8xf32>
    %19 = tpu.matmul %17, %18, %cst {dimension_numbers = #tpu.dot_dimension_numbers<[1], [0], [0], [1], [0, 0, 1, 1], [], []>} : vector<128x8xbf16>, vector<8x8xbf16>, vector<128x8xf32> -> vector<128x8xf32>
    %c0_9 = arith.constant 0 : index
    %c0_10 = arith.constant 0 : index
    %20 = vector.load %arg6[%c0_9, %c0_10] : memref<1x8xf32, #tpu.memory_space<vmem>>, vector<1x8xf32>
    %21 = vector.broadcast %20 : vector<1x8xf32> to vector<128x8xf32>
    %22 = arith.addf %19, %21 : vector<128x8xf32>
    %23 = arith.truncf %22 : vector<128x8xf32> to vector<128x8xbf16>
    %c0_11 = arith.constant 0 : index
    %c0_12 = arith.constant 0 : index
    %24 = vector.load %arg12[%c0_11, %c0_12] : memref<8x256xbf16, #tpu.memory_space<vmem>>, vector<8x256xbf16>
    %cst_13 = arith.constant dense<0.000000e+00> : vector<128x256xf32>
    %25 = tpu.matmul %23, %24, %cst_13 {dimension_numbers = #tpu.dot_dimension_numbers<[1], [0], [0], [1], [0, 0, 1, 1], [], []>} : vector<128x8xbf16>, vector<8x256xbf16>, vector<128x256xf32> -> vector<128x256xf32>
    %cst_14 = arith.constant dense<0xFF800000> : vector<128xf32>
    %26 = vector.multi_reduction <maximumf>, %25, %cst_14 [1] : vector<128x256xf32> to vector<128xf32>
    %27 = vector.shape_cast %26 : vector<128xf32> to vector<128x1xf32>
    %28 = vector.broadcast %27 : vector<128x1xf32> to vector<128x256xf32>
    %29 = arith.subf %25, %28 : vector<128x256xf32>
    %30 = math.exp %29 : vector<128x256xf32>
    %cst_15 = arith.constant dense<0.000000e+00> : vector<128xf32>
    %31 = vector.multi_reduction <add>, %30, %cst_15 [1] : vector<128x256xf32> to vector<128xf32>
    %32 = vector.shape_cast %31 : vector<128xf32> to vector<128x1xf32>
    %33 = arith.truncf %30 : vector<128x256xf32> to vector<128x256xbf16>
    %c0_16 = arith.constant 0 : index
    %c0_17 = arith.constant 0 : index
    %34 = vector.load %arg13[%c0_16, %c0_17] : memref<256x8xbf16, #tpu.memory_space<vmem>>, vector<256x8xbf16>
    %cst_18 = arith.constant dense<0.000000e+00> : vector<128x8xf32>
    %35 = tpu.matmul %33, %34, %cst_18 {dimension_numbers = #tpu.dot_dimension_numbers<[1], [0], [0], [1], [0, 0, 1, 1], [], []>} : vector<128x256xbf16>, vector<256x8xbf16>, vector<128x8xf32> -> vector<128x8xf32>
    %36 = tpu.reciprocal %32 : vector<128x1xf32> -> vector<128x1xf32>
    %37 = vector.broadcast %36 : vector<128x1xf32> to vector<128x8xf32>
    %38 = arith.mulf %35, %37 : vector<128x8xf32>
    %39 = tpu.transpose %38, [1, 0] : vector<128x8xf32> -> vector<8x128xf32>
    %40 = arith.truncf %39 : vector<8x128xf32> to vector<8x128xbf16>
    %c0_19 = arith.constant 0 : index
    %c0_20 = arith.constant 0 : index
    %41 = vector.load %arg9[%c0_19, %c0_20] : memref<8x8xbf16, #tpu.memory_space<vmem>>, vector<8x8xbf16>
    %cst_21 = arith.constant dense<0.000000e+00> : vector<8x128xf32>
    %42 = tpu.matmul %41, %40, %cst_21 {dimension_numbers = #tpu.dot_dimension_numbers<[1], [0], [0], [1], [0, 0, 1, 1], [], []>} : vector<8x8xbf16>, vector<8x128xbf16>, vector<8x128xf32> -> vector<8x128xf32>
    %43 = arith.addf %11, %42 : vector<8x128xf32>
    %c0_22 = arith.constant 0 : index
    %c0_23 = arith.constant 0 : index
    %44 = vector.load %arg10[%c0_22, %c0_23] : memref<8x1xf32, #tpu.memory_space<vmem>>, vector<8x1xf32>
    %45 = vector.broadcast %44 : vector<8x1xf32> to vector<8x128xf32>
    %46 = arith.addf %43, %45 : vector<8x128xf32>
    %c0_24 = arith.constant 0 : index
    %c0_25 = arith.constant 0 : index
    %c0_26 = arith.constant 0 : index
    %47 = vector.load %arg11[%c0_24, %c0_25, %c0_26] : memref<1x8x128xf32, #tpu.memory_space<vmem>>, vector<1x8x128xf32>
    %48 = vector.shape_cast %47 : vector<1x8x128xf32> to vector<8x128xf32>
    %49 = vector.shape_cast %46 : vector<8x128xf32> to vector<1x8x128xf32>
    tpu.vector_store %arg11[%c0_24, %c0_25, %c0_26], %49 {strides = array<i32>} : memref<1x8x128xf32, #tpu.memory_space<vmem>>, vector<1x8x128xf32>,
    return
  }
  func.func @transform_0(%arg0: i32, %arg1: i32, %arg2: i32) -> (i32, i32, i32) {
    %c0_i32 = arith.constant 0 : i32
    %c0_i32_0 = arith.constant 0 : i32
    return %arg0, %c0_i32, %arg1 : i32, i32, i32
  }
  func.func @transform_1(%arg0: i32, %arg1: i32, %arg2: i32) -> (i32, i32, i32) {
    %c0_i32 = arith.constant 0 : i32
    %c0_i32_0 = arith.constant 0 : i32
    %c0_i32_1 = arith.constant 0 : i32
    return %arg0, %c0_i32, %c0_i32_0 : i32, i32, i32
  }
  func.func @transform_2(%arg0: i32, %arg1: i32, %arg2: i32) -> (i32, i32) {
    %c0_i32 = arith.constant 0 : i32
    %c0_i32_0 = arith.constant 0 : i32
    %c0_i32_1 = arith.constant 0 : i32
    return %c0_i32, %c0_i32_0 : i32, i32
  }
  func.func @transform_3(%arg0: i32, %arg1: i32, %arg2: i32) -> (i32, i32) {
    %c0_i32 = arith.constant 0 : i32
    %c0_i32_0 = arith.constant 0 : i32
    %c0_i32_1 = arith.constant 0 : i32
    return %c0_i32, %c0_i32_0 : i32, i32
  }
  func.func @transform_4(%arg0: i32, %arg1: i32, %arg2: i32) -> (i32, i32) {
    %c0_i32 = arith.constant 0 : i32
    %c0_i32_0 = arith.constant 0 : i32
    %c0_i32_1 = arith.constant 0 : i32
    return %c0_i32, %c0_i32_0 : i32, i32
  }
  func.func @transform_5(%arg0: i32, %arg1: i32, %arg2: i32) -> (i32, i32) {
    %c0_i32 = arith.constant 0 : i32
    %c0_i32_0 = arith.constant 0 : i32
    %c0_i32_1 = arith.constant 0 : i32
    return %c0_i32, %c0_i32_0 : i32, i32
  }
  func.func @transform_6(%arg0: i32, %arg1: i32, %arg2: i32) -> (i32, i32) {
    %c0_i32 = arith.constant 0 : i32
    %c0_i32_0 = arith.constant 0 : i32
    %c0_i32_1 = arith.constant 0 : i32
    return %c0_i32, %c0_i32_0 : i32, i32
  }
  func.func @transform_7(%arg0: i32, %arg1: i32, %arg2: i32) -> (i32, i32) {
    %c0_i32 = arith.constant 0 : i32
    %c0_i32_0 = arith.constant 0 : i32
    %c0_i32_1 = arith.constant 0 : i32
    return %c0_i32, %c0_i32_0 : i32, i32
  }
  func.func @transform_8(%arg0: i32, %arg1: i32, %arg2: i32) -> (i32, i32, i32) {
    %c2_i32 = arith.constant 2 : i32
    %0 = arith.muli %arg1, %c2_i32 : i32
    %1 = arith.addi %0, %arg2 : i32
    %c0_i32 = arith.constant 0 : i32
    %c0_i32_0 = arith.constant 0 : i32
    return %arg0, %c0_i32, %1 : i32, i32, i32
  }
}

</mosaic_0001>

<bundles_post_ra>
// kernel: wf_causal_conv3d_attn_block.2
= control target key start
LH: loop header
LB: loop body
LE: loop exit
PB: predicated region body
PF: predicated region fallthrough
CT: control target
= control target key end

     0   :  { %s646_s15 = smov 0   ;;  %s648_s16 = smov 0   ;;  %s722_s0 = inlined_call_operand.vmem [shape: f32[2,8,768], index: 0, kind: input, shape index: {}]   ;;  %s723_s1 = inlined_call_operand.vmem [shape: f32[8,8], index: 1, kind: input, shape index: {}]   ;;  %s724_s2 = inlined_call_operand.vmem [shape: f32[8,1], index: 2, kind: input, shape index: {}]   ;;  %s725_s3 = inlined_call_operand.vmem [shape: f32[8,1], index: 3, kind: input, shape index: {}]   ;;  %s726_s4 = inlined_call_operand.vmem [shape: f32[2,8,2], index: 4, kind: output, shape index: {}]  }
   0x1   :  { %s650_s17 = smov 0   ;;  %s652_s18 = smov 0  }
   0x2   :  { %s654_s19 = smov 0  }
   0x3 LB: > { %s23_s20 = sadd.s32 1, %s607_s17  ;;  %s26_s21 = sadd.s32 1, %s611_s18  ;;  %s615_s19 = sphi %s654_s19, %s14_s19   ;;  %s611_s18 = sphi %s652_s18, %s730_s18   ;;  %s607_s17 = sphi %s650_s17, %s729_s17   ;;  %s603_s16 = sphi %s648_s16, %s728_s16   ;;  %s599_s15 = sphi %s646_s15, %s727_s15  }
   0x4   : > { %p24_p0 = scmp.ge.s32.totalorder %s23_s20, 6  ;;  %p503_p1 = scmp.ge.s32.totalorder %s615_s19, 1 }
   0x5   : > { %p179_p2 = scmp.lt.s32.totalorder %s615_s19, 13 }
   0x6   : > { %s732_s20 = smov (%p24_p0, %s23_s20), 0  ;;  %s734_s21 = smov (!%p24_p0, %s26_s21), %s611_s18 }
   0x7   : > { %p180_p3 = pnand %p503_p1, %p179_p2  ;;  %p28_p4 = scmp.ge.s32.totalorder %s734_s21, 2 }
   0x8   : > { %p207_p5 = scmp.lt.s32.totalorder (!%p180_p3), %s603_s16, 1  ;;  %p209_p6 = scmp.lt.s32.totalorder (!%p180_p3), %s599_s15, 5 }
   0x9   : > { %s736_s21 = smov (%p28_p4, %s734_s21), 0  ;;  %183 = sbr.rel (%p180_p3) target bundleno = 753 (0x2f1), region = 36 }
   0xa   : > { %p506_p7 = scmp.ne.s32.totalorder (!%p180_p3), %s599_s15, 0 }
  0x10   : > { %s738_s16 = smov (!%p207_p5, %s603_s16), 1  ;;  %222 = sbr.rel (%p506_p7) target bundleno = 23 (0x17), region = 40 }
  0x11   : > { %s210_s22 = scalar_select %p209_p6, %s599_s15, 5 }
  0x12   : > { %s526_s23 = smul.u32 6, %s738_s16  ;;  %s505_s24 = sshll.u32 %s738_s16, 3  ;;  %vm223_vm0 = vcmask (!%p506_p7), 7168   ;;  %v617_v0 = vmov (!%p506_p7), 0.0  }
  0x13   : > { %s683_s27 = scalar_lea.vmem %s726_s4, %s505_s24  ;;  %224 = vst.msk [vmem:[#allocation2] sm:$0xff] (!%p506_p7), %vm223_vm0, %v617_v0  ;;  %225 = vst.msk [vmem:[#allocation3] sm:$0xff] (!%p506_p7), %vm223_vm0, %v617_v0 }
  0x14   : > { %s212_s28 = sadd.s32 %s526_s23, %s210_s22 }
  0x15   : > { %s504_s29 = sshll.u32 %s212_s28, 3 }
  0x16   : > { %s214_s6 = scalar_lea.vmem %s722_s0, %s504_s29 }
  0x17 PF: > { %v226_v1 = vld [vmem:[%s214_s6] sm:$0xff]  ;;  %s235_s7 = scvt.s32.f32 %s599_s15  ;;  %vm245_vm1 = vcmask 7168   ;;  %p507_p8 = scmp.ne.s32.totalorder %s599_s15, 5 }
  0x18   : > { %227 = vadd.xlane.f32.xlu0 %v226_v1  ;;  %v264_v21 = vld [vmem:[%s723_s1] sm:$0xff] (!%p507_p8)  ;;  %vm265_vm2 = vcmask (!%p507_p8), 64512   ;;  %v618_v22 = vmov (!%p507_p8), 0.0   ;;  %vm619_vm3 = vmmov (!%p507_p8), 0   ;;  %s620_s23 = smov (!%p507_p8), 1   ;;  %vm427_vm4 = vcmask (!%p507_p8), 15368  }
  0x19   : > { %s238_s8 = sadd.f32 1.0, %s235_s7  ;;  %s250_s9 = smul.f32 128.0, %s235_s7  ;;  %516 = vmatprep.subr.mxu0 (!%p507_p8), %v618_v22  ;;  %518 = vmatprep.mubr.msk.f32.mxu0 (!%p507_p8), %vm619_vm3, %v618_v22  ;;  %v417_v34 = vld [vmem:[%s724_s2] sm:$0xff] (!%p507_p8) }
  0x1a   : > { %v236_v4 = vld [vmem:[#allocation2] sm:$0xff]  ;;  %v247_v16 = vld [vmem:[#allocation3] sm:$0xff]  ;;  %521 = vmatprep.subr.mxu1 (!%p507_p8), %v618_v22  ;;  %523 = vmatprep.mubr.msk.f32.mxu1 (!%p507_p8), %vm619_vm3, %v618_v22 }
  0x1b   : > { %v239_v2 = vstv %s238_s8  ;;  %v419_v37 = vld [vmem:[%s725_s3] sm:$0xff] (!%p507_p8) }
  0x1c   : > { %573 = vrcp.f32 %v239_v2 }
  0x26   : > { %v574_v3 = vpop.eup %573 }
  0x27   : > { %527 = vpush %v574_v3 }
  0x58   : > { %s528_s10 = spop %527 }
  0x59   : > { %s254_s11 = smul.f32 %s528_s10, %s250_s9  ;;  %v242_v7 = vstv %s528_s10 }
  0x5b   : > { %v255_v10 = vstv %s254_s11 }
  0xa5   : > { %v228_v5 = vpop.xlane.xlu0 %227 }
  0xa6   : > { %v230_v6 = vmul.f32 0.0078125, %v228_v5 }
  0xa8   : > { %v237_v8 = vsub.f32 %v230_v6, %v236_v4  ;;  %v231_v9 = vsub.f32 %v226_v1, %v230_v6 }
  0xaa   : > { %v243_v11 = vmul.f32 %v242_v7, %v237_v8  ;;  %v249_v12 = vmul.f32 %v237_v8, %v237_v8  ;;  %v232_v13 = vmul.f32 %v231_v9, %v231_v9 }
  0xac   : > { %v244_v14 = vadd.f32 %v243_v11, %v236_v4  ;;  %v256_v15 = vmul.f32 %v255_v10, %v249_v12  ;;  %233 = vadd.xlane.f32.xlu0 %v232_v13 }
  0xae   : > { %246 = vst.msk [vmem:[#allocation2] sm:$0xff] %vm245_vm1, %v244_v14 }
  0xb5   : > { %v263_v20 = vld [vmem:[#allocation2] sm:$0xff] (!%p507_p8) }
  0xb6   : > { %517 = vmatpush3.msra.mxu0 (!%p507_p8), %v263_v20 }
  0xb7   : > { %519 = vmatmul.mubr.msk.f32.vlgmr.msra.gmra.mrb[0].mxu0 (!%p507_p8), %vm265_vm2, %v264_v21 }
 0x138   : > { %262 = sbr.rel (%p507_p8) target bundleno = 753 (0x2f1), region = 44 }
 0x139   : > { %v234_v17 = vpop.xlane.xlu0 %233 }
 0x13a   : > { %v248_v18 = vadd.f32 %v247_v16, %v234_v17 }
 0x13c   : > { %v257_v19 = vadd.f32 %v256_v15, %v248_v18 }
 0x13e   : > { %258 = vst.msk [vmem:[#allocation3] sm:$0xff] %vm245_vm1, %v257_v19 }
 0x145   : > { %v340_v27 = vld [vmem:[#allocation3] sm:$0xff] }
 0x18a   : > { %v335_v23 = vpop.f32.mrb[0].mxu0 }
 0x18b   : > { %v339_v24 = vsub.f32 %v263_v20, %v335_v23  ;;  %v520_v25 = vpop.f32.mrb[1].mxu0 }
 0x18d   : > { %v341_v26 = vmul.f32 768.0, %v339_v24 }
 0x18f   : > { %v342_v28 = vmul.f32 %v341_v26, %v339_v24 }
 0x191   : > { %v343_v29 = vadd.f32 %v342_v28, %v340_v27 }
 0x193   : > { %522 = vmatpush3.msra.mxu1 %v343_v29 }
 0x194   : > { %524 = vmatmul.mubr.msk.f32.vlgmr.msra.gmra.mrb[0].mxu1 %vm265_vm2, %v264_v21 }
 0x267   : > { %v410_v30 = vpop.f32.mrb[0].mxu1 }
 0x268   : > { %v414_v31 = vmul.f32 0.0013020834, %v410_v30  ;;  %v525_v32 = vpop.f32.mrb[1].mxu1 }
 0x26a   : > { %v415_v33 = vadd.f32 1e-06, %v414_v31 }
 0x26c   : > { %575 = vrsqrt.f32 %v415_v33 }
 0x276   : > { %v576_v35 = vpop.eup %575 }
 0x277   : > { %v418_v36 = vmul.f32 %v576_v35, %v417_v34 }
 0x279   : > { %v420_v38 = vmul.f32 %v418_v36, %v335_v23  ;;  %422 = vst.msk [vmem:[%s683_s27] sm:$0xff] %vm245_vm1, %v418_v36 }
 0x27b   : > { %v421_v39 = vsub.f32 %v419_v37, %v420_v38 }
 0x27d   : > { %424 = vrot.lane.b32.xlu0 %v421_v39, %s620_s23 }
 0x2ef   : > { %v425_v40 = vpop.permute.xlu0 %424 }
 0x2f0   : > { %428 = vst.msk [vmem:[%s683_s27] sm:$0xff] %vm427_vm4, %v425_v40 }
 0x2f1 PF: > { %s14_s19 = sadd.s32 1, %s615_s19   ;;  %s727_s15 = smov %s607_s17 }
 0x2f2   : > { %p11_p9 = scmp.ge.s32.totalorder %s14_s19, 14   ;;  %s728_s16 = smov %s611_s18 }
 0x2f3   : > { %s729_s17 = smov %s732_s20  ;;  %s730_s18 = smov %s736_s21 }
 0x2f4   :  { %13 = sbr.rel (!%p11_p9) target bundleno = 3 (0x3), region = 74 }

// kernel: wf_causal_conv3d_attn_block.3
= control target key start
LH: loop header
LB: loop body
LE: loop exit
PB: predicated region body
PF: predicated region fallthrough
CT: control target
= control target key end

     0   :  { %s1914_s27 = smov 0   ;;  %s1916_s28 = smov 0   ;;  %s2207_s0 = inlined_call_operand.vmem [shape: f32[2,8,768], index: 0, kind: input, shape index: {}]   ;;  %s2208_s1 = inlined_call_operand.vmem [shape: f32[2,8,2], index: 1, kind: input, shape index: {}]   ;;  %s2209_s2 = inlined_call_operand.vmem [shape: bf16[8,8], index: 2, kind: input, shape index: {}]   ;;  %s2210_s3 = inlined_call_operand.vmem [shape: f32[1,8], index: 3, kind: input, shape index: {}]   ;;  %s2211_s4 = inlined_call_operand.vmem [shape: bf16[16,8], index: 4, kind: input, shape index: {}]   ;;  %s2212_s5 = inlined_call_operand.vmem [shape: f32[16,1], index: 5, kind: input, shape index: {}]   ;;  %s2213_s6 = inlined_call_operand.vmem [shape: bf16[8,8], index: 6, kind: input, shape index: {}]   ;;  %s2214_s7 = inlined_call_operand.vmem [shape: f32[8,1], index: 7, kind: input, shape index: {}]   ;;  %s2215_s8 = inlined_call_operand.vmem [shape: f32[2,8,768], index: 8, kind: output, shape index: {}]  }
   0x1   :  { %s1918_s29 = smov 0   ;;  %s1920_s30 = smov 0  }
   0x2   :  { %s1922_s9 = smov 0   ;;  %s1924_s10 = smov 0  }
   0x3   :  { %s1926_s11 = smov 0  }
   0x4 LB: > { %s30_s12 = sadd.s32 1, %s1843_s30  ;;  %s33_s13 = sadd.s32 1, %s1847_s9  ;;  %s1855_s11 = sphi %s1926_s11, %s18_s11   ;;  %s1851_s10 = sphi %s1924_s10, %s2227_s10   ;;  %s1847_s9 = sphi %s1922_s9, %s2226_s9   ;;  %s1843_s30 = sphi %s1920_s30, %s2225_s30   ;;  %s1839_s29 = sphi %s1918_s29, %s2224_s29   ;;  %s1835_s28 = sphi %s1916_s28, %s2223_s28   ;;  %s1831_s27 = sphi %s1914_s27, %s2222_s27  }
   0x5   : > { %p31_p0 = scmp.ge.s32.totalorder %s30_s12, 2  ;;  %p1455_p1 = scmp.ge.s32.totalorder %s1855_s11, 1 }
   0x6   : > { %p303_p2 = scmp.lt.s32.totalorder %s1855_s11, 13  ;;  %s37_s14 = sadd.s32 1, %s1851_s10 }
   0x7   : > { %s2229_s12 = smov (%p31_p0, %s30_s12), 0  ;;  %s2231_s13 = smov (!%p31_p0, %s33_s13), %s1847_s9 }
   0x8   : > { %2216 = sst [smem:[#allocation4_spill]] %s2229_s12  ;;  %p304_p3 = pnand %p1455_p1, %p303_p2 }
   0x9   : > { %p35_p4 = scmp.ge.s32.totalorder %s2231_s13, 3  ;;  %s1456_s15 = sshll.u32 (!%p304_p3), %s1835_s28, 1 }
   0xa   : > { %307 = sbr.rel (%p304_p3) target bundleno = 2029 (0x7ed), region = 52  ;;  %p351_p6 = scmp.lt.s32.totalorder (!%p304_p3), %s1839_s29, 1 }
   0xb   : > { %s2233_s13 = smov (%p35_p4, %s2231_s13), 0  ;;  %s2235_s14 = smov (!%p35_p4, %s37_s14), %s1851_s10 }
   0xc   : > { %2217 = sst [smem:[#allocation5_spill]] %s2233_s13  ;;  %p39_p5 = scmp.ge.s32.totalorder %s2235_s14, 2 }
   0xd   : > { %p353_p7 = scmp.lt.s32.totalorder (!%p304_p3), %s1456_s15, 5  ;;  %s365_s16 = sadd.s32 (!%p304_p3), %s1831_s27, %s1456_s15 }
   0xe   : > { %s2237_s14 = smov (%p39_p5, %s2235_s14), 0  ;;  %p368_p8 = scmp.lt.s32.totalorder (!%p304_p3), %s365_s16, 5 }
   0xf   : > { %2218 = sst [smem:[#allocation6_spill]] %s2237_s14  ;;  %p1461_p9 = scmp.ne.s32.totalorder (!%p304_p3), %s1831_s27, 0 }
  0x11   : > { %s2239_s29 = smov (!%p351_p6, %s1839_s29), 1  ;;  %s2241_s15 = smov (!%p353_p7, %s1456_s15), 5 }
  0x12   : > { %s1617_s17 = smul.u32 6, %s2239_s29  ;;  %s1458_s18 = sshll.u32 %s2239_s29, 3 }
  0x13   : > { %s363_s21 = scalar_lea.vmem %s2208_s1, %s1458_s18  ;;  %s2243_s16 = smov (!%p368_p8, %s365_s16), 5 }
  0x14   : > { %s356_s22 = sadd.s32 %s1617_s17, %s2241_s15  ;;  %v1962_v0 = vld [vmem:[%s363_s21] sm:$0xff]  ;;  %s371_s28 = sadd.s32 %s1617_s17, %s2243_s16 }
  0x15   : > { %s1457_s23 = sshll.u32 %s356_s22, 3  ;;  %s1460_s14 = sshll.u32 %s371_s28, 3 }
  0x16   : > { %s1967_s26 = scalar_lea.vmem %s2207_s0, %s1457_s23  ;;  %s1972_s29 = scalar_lea.vmem %s2215_s8, %s1460_s14 }
  0x17   : > { %381 = sbr.rel (%p1461_p9) target bundleno = 581 (0x245), region = 56  ;;  %s1975_s15 = smov (!%p1461_p9), 0  }
  0x1e LB: >> { %v1861_v1 = vmov 0   ;;  %v1862_v2 = vmov 1   ;;  %v1863_v3 = vmov 0.0   ;;  %vm1864_vm0 = vmmov 0   ;;  %v409_v4 = vld [vmem:[%s2212_s5 + $0x8] sm:$0xff]  ;;  %v408_v5 = vld [vmem:[%s2212_s5] sm:$0xff]  ;;  %s1859_s15 = sphi %s1975_s15, %s387_s15  }
  0x1f   : >> { %1690 = vset.pattern.permute.xlu0 %v1861_v1  ;;  %1692 = vset.pattern.permute.xlu1 %v1861_v1  ;;  %s1462_s17 = sshll.u32 %s1859_s15, 7  ;;  %vm429_vm1 = vcmask 1043456   ;;  %v1694_v13 = vld [vmem:[%s2211_s4] sm:$0xff]   ;;  %vm425_vm2 = vcmask 64512   ;;  %s387_s15 = sadd.s32 1, %s1859_s15  }
  0x20   : >> { %396 = vperm.xlu0 %1690, %v1962_v0   ;;  %1570 = vmatprep.subr.bf16.mxu0 %v1863_v3  ;;  %s389_s18 = sshra.s32 %s1462_s17, 7  ;;  %s518_s25 = sshra.s32 %s1462_s17, 4 }
  0x21   : >> { %1572 = vmatprep.mubr.msk.bf16.mxu0 %vm1864_vm0, %v1863_v3  ;;  %417 = vperm.xlu1 %1692, %v409_v4   ;;  %s1463_s19 = sshll.u32 %s389_s18, 3  ;;  %s1466_s23 = sshll.u32 %s389_s18, 2 }
  0x22   : >> { %s392_s20 = scalar_lea.vmem %s1967_s26, %s1463_s19  ;;  %s476_s24 = scalar_lea.vmem [#allocation2], %s1466_s23 }
  0x23   : >> { %v393_v7 = vld [vmem:[%s392_s20] sm:$0xff]  ;;  %s1467_s28 = sshll.u32 %s518_s25, 3  ;;  %p384_p10 = scmp.ge.s32.totalorder %s387_s15, 2  }
  0x24   : >> { %1691 = vset.pattern.permute.xlu0 %v1862_v2  ;;  %s521_s12 = scalar_lea.vmem [#allocation3], %s1467_s28 }
  0x25   : >> { %401 = vperm.xlu0 %1691, %v1962_v0   ;;  %412 = vperm.xlu1 %1692, %v408_v5  }
  0x29   : >> { %1693 = vset.pattern.permute.xlu0 %v1861_v1 }
  0x9f   : >> { %v397_v6 = vpop.permute.xlu0 %396 }
  0xa0   : >> { %v399_v8 = vmul.f32 %v397_v6, %v393_v7  ;;  %v418_v14 = vpop.permute.xlu1 %417 }
  0xa4   : >> { %v402_v9 = vpop.permute.xlu0 %401  ;;  %v413_v15 = vpop.permute.xlu1 %412 }
  0xa5   : >> { %v404_v10 = vadd.f32 %v402_v9, %v399_v8 }
  0xa7   : >> { %v405_v11 = vpack.c.bf16 %v404_v10, %v404_v10 }
  0xa9   : >> { %v431_v12 = vsel %vm429_vm1, %v405_v11, 0 }
  0xaa   : >> { %1571 = vmatpush3.bf16.msra.mxu0 %v431_v12 }
  0xad   : >> { %1573 = vmatmul.mubr.msk.bf16.vlgmr.msra.gmra.mrb[0].mxu0 %vm425_vm2, %v1694_v13 }
 0x180   : >> { %v467_v16 = vpop.f32.mrb[0].mxu0 }
 0x181   : >> { %v468_v17 = vadd.f32 %v467_v16, %v413_v15  ;;  %v1574_v18 = vpop.f32.mrb[1].mxu0 }
 0x182   : >> { %v470_v19 = vpop.f32.mrb[2].mxu0 }
 0x183   : >> { %v474_v20 = vpack.c.bf16 %v468_v17, %v468_v17  ;;  %v471_v21 = vadd.f32 %v470_v19, %v418_v14  ;;  %v1575_v22 = vpop.f32.mrb[3].mxu0 }
 0x185   : >> { %477 = vst [vmem:[%s476_s24] sm:$0xf] %v474_v20  ;;  %478 = vxpose.xlu1.b32.start.end [1/1] (short) %v471_v21, 128 }
 0x205   : >> { %v494_v23 = vpop.trf.xlu1 }
 0x209   : >> { %v495_v24 = vpop.trf.xlu1 }
 0x20a   : >> { %v510_v25 = vpack.c.bf16 %v495_v24, %v494_v23 }
 0x20c   : >> { %522 = vst.msk [vmem:[%s521_s12] sm:$0xff] %vm425_vm2, %v510_v25 }
 0x20d   : >> { %v496_v26 = vpop.trf.xlu1 }
 0x211   : >> { %v497_v27 = vpop.trf.xlu1 }
 0x212   : >> { %v511_v28 = vpack.c.bf16 %v497_v27, %v496_v26 }
 0x214   : >> { %523 = vst.msk [vmem:[%s521_s12 + $0x8] sm:$0xff] %vm425_vm2, %v511_v28 }
 0x215   : >> { %v498_v29 = vpop.trf.xlu1 }
 0x219   : >> { %v499_v30 = vpop.trf.xlu1 }
 0x21a   : >> { %v512_v31 = vpack.c.bf16 %v499_v30, %v498_v29 }
 0x21c   : >> { %524 = vst.msk [vmem:[%s521_s12 + $0x10] sm:$0xff] %vm425_vm2, %v512_v31 }
 0x21d   : >> { %v500_v32 = vpop.trf.xlu1 }
 0x221   : >> { %v501_v33 = vpop.trf.xlu1 }
 0x222   : >> { %v513_v34 = vpack.c.bf16 %v501_v33, %v500_v32 }
 0x224   : >> { %525 = vst.msk [vmem:[%s521_s12 + $0x18] sm:$0xff] %vm425_vm2, %v513_v34 }
 0x225   : >> { %v502_v35 = vpop.trf.xlu1 }
 0x229   : >> { %v503_v36 = vpop.trf.xlu1 }
 0x22a   : >> { %v514_v37 = vpack.c.bf16 %v503_v36, %v502_v35 }
 0x22c   : >> { %526 = vst.msk [vmem:[%s521_s12 + $0x20] sm:$0xff] %vm425_vm2, %v514_v37 }
 0x22d   : >> { %v504_v38 = vpop.trf.xlu1 }
 0x231   : >> { %v505_v39 = vpop.trf.xlu1 }
 0x232   : >> { %v515_v40 = vpack.c.bf16 %v505_v39, %v504_v38 }
 0x234   : >> { %527 = vst.msk [vmem:[%s521_s12 + $0x28] sm:$0xff] %vm425_vm2, %v515_v40 }
 0x235   : >> { %v506_v41 = vpop.trf.xlu1 }
 0x239   : >> { %v507_v42 = vpop.trf.xlu1 }
 0x23a   : >> { %v516_v43 = vpack.c.bf16 %v507_v42, %v506_v41 }
 0x23c   : >> { %528 = vst.msk [vmem:[%s521_s12 + $0x30] sm:$0xff] %vm425_vm2, %v516_v43 }
 0x23d   : >> { %v508_v44 = vpop.trf.xlu1 }
 0x23e   : > { %386 = sbr.rel (!%p384_p10) target bundleno = 30 (0x1e), region = 100 }
 0x241   : >> { %v509_v45 = vpop.trf.xlu1 }
 0x242   : >> { %v517_v46 = vpack.c.bf16 %v509_v45, %v508_v44 }
 0x244   : >> { %529 = vst.msk [vmem:[%s521_s12 + $0x38] sm:$0xff] %vm425_vm2, %v517_v46 }
 0x245 PF: > { %v1865_v47 = vmov 0   ;;  %v1866_v48 = vmov 1   ;;  %s1468_s13 = sshll.u32 %s1831_s27, 7  ;;  %v587_v54 = vld [vmem:[%s2209_s2] sm:$0xf]  ;;  %vm620_vm3 = vcmask 1043456  }
 0x246   : > { %1695 = vset.pattern.permute.xlu0 %v1865_v47  ;;  %797 = vmatprep.mubr.bf16.mxu1 %v1865_v47  ;;  %s531_s14 = sshra.s32 %s1468_s13, 7  ;;  %v622_v55 = vsel %vm620_vm3, %v587_v54, 0  ;;  %vm595_vm4 = vcmask 64512   ;;  %v729_v16 = vld [vmem:[#allocation2] sm:$0xff]  ;;  %vm1868_vm5 = vmmov 0  }
 0x247   : > { %538 = vperm.xlu0 %1695, %v1962_v0   ;;  %s1469_s15 = sshll.u32 %s531_s14, 3  ;;  %1616 = vmatprep.subr.msk.bf16.mxu0 %vm620_vm3, %v587_v54  ;;  %v1480_v17 = vcombine.high %v729_v16, %v729_v16  ;;  %v1479_v18 = vcombine.low %v729_v16, %v729_v16  ;;  %v1470_v21 = vld [vmem:[%s2210_s3] ss:$0 sm:$0xff] }
 0x248   : > { %s2012_s16 = scalar_lea.vmem %s1967_s26, %s1469_s15  ;;  %1577 = vmatpush3.bf16.msra.mxu0 %v622_v55 }
 0x249   : > { %v535_v50 = vld [vmem:[%s2012_s16] sm:$0xff]  ;;  %1481 = vmatprep.subr.msk.bf16.mxu1 %vm620_vm3, %v1480_v17  ;;  %v760_v19 = vsel %vm620_vm3, %v1479_v18, 0 }
 0x24a   : > { %766 = vmatpush1.bf16.msra.mxu1 %v760_v19 }
 0x24b   : > { %1696 = vset.pattern.permute.xlu0 %v1866_v48  ;;  %v1097_v19 = vld [vmem:[#allocation3 + $0x58] sm:$0xff] }
 0x24c   : > { %543 = vperm.xlu0 %1696, %v1962_v0  }
 0x250   : > { %1697 = vset.pattern.permute.xlu0 %v1865_v47 }
 0x2c6   : > { %v539_v49 = vpop.permute.xlu0 %538 }
 0x2c7   : > { %v541_v51 = vmul.f32 %v539_v49, %v535_v50 }
 0x2cb   : > { %v544_v52 = vpop.permute.xlu0 %543 }
 0x2cc   : > { %v546_v53 = vadd.f32 %v544_v52, %v541_v51 }
 0x2ce   : > { %547 = vxpose.xlu1.b32.start.end [1/1] (short) %v546_v53, 128 }
 0x34e   : > { %v563_v56 = vpop.trf.xlu1 }
 0x352   : > { %v564_v57 = vpop.trf.xlu1 }
 0x353   : > { %v579_v58 = vpack.c.bf16 %v564_v57, %v563_v56 }
 0x355   : > { %1578 = vmatprep.mubr.msk.bf16.mxu0 %vm595_vm4, %v579_v58 }
 0x356   : > { %v565_v59 = vpop.trf.xlu1 }
 0x35a   : > { %v566_v60 = vpop.trf.xlu1 }
 0x35b   : > { %v580_v61 = vpack.c.bf16 %v566_v60, %v565_v59 }
 0x35d   : > { %1579 = vmatmul.mubr.msk.bf16.vlgmr.msra.gmra.mrb[0].mxu0 %vm595_vm4, %v580_v61 }
 0x35e   : > { %v567_v62 = vpop.trf.xlu1 }
 0x362   : > { %v568_v63 = vpop.trf.xlu1 }
 0x363   : > { %v581_v0 = vpack.c.bf16 %v568_v63, %v567_v62  ;;  %v1094_v62 = vld [vmem:[#allocation3 + $0x40] sm:$0xff] }
 0x364   : > { %v1086_v63 = vld [vmem:[#allocation3] sm:$0xff]  ;;  %1504 = vmatprep.subr.bf16.mxu0 %v1094_v62  ;;  %1600 = vmatprep.subr.bf16.mxu1 %v1094_v62 }
 0x365   : > { %1582 = vmatprep.mubr.msk.bf16.mxu0 %vm595_vm4, %v581_v0  ;;  %v1095_v0 = vld [vmem:[#allocation3 + $0x48] sm:$0xff]  ;;  %1505 = vmatpush3.bf16.msra.mxu0 %v1086_v63 }
 0x366   : > { %v569_v1 = vpop.trf.xlu1  ;;  %1506 = vmatprep.subr.bf16.mxu0 %v1095_v0 }
 0x36a   : > { %v570_v2 = vpop.trf.xlu1 }
 0x36b   : > { %v582_v3 = vpack.c.bf16 %v570_v2, %v569_v1  ;;  %v1087_v1 = vld [vmem:[#allocation3 + $0x8] sm:$0xff]  ;;  %v1096_v2 = vld [vmem:[#allocation3 + $0x50] sm:$0xff] }
 0x36c   : > { %1507 = vmatpush3.bf16.msra.mxu0 %v1087_v1 }
 0x36d   : > { %1583 = vmatmul.mubr.msk.bf16.gmra.mrb[4].mxu0 %vm595_vm4, %v582_v3  ;;  %1508 = vmatprep.subr.bf16.mxu0 %v1096_v2  ;;  %v1088_v3 = vld [vmem:[#allocation3 + $0x10] sm:$0xff] }
 0x36e   : > { %v571_v4 = vpop.trf.xlu1 }
 0x370   : > { %1509 = vmatpush3.bf16.msra.mxu0 %v1088_v3 }
 0x371   : > { %1510 = vmatprep.subr.bf16.mxu0 %v1097_v19 }
 0x372   : > { %v572_v5 = vpop.trf.xlu1 }
 0x373   : > { %v583_v6 = vpack.c.bf16 %v572_v5, %v571_v4 }
 0x375   : > { %1586 = vmatprep.mubr.msk.bf16.mxu0 %vm595_vm4, %v583_v6 }
 0x376   : > { %v573_v7 = vpop.trf.xlu1 }
 0x37a   : > { %v574_v8 = vpop.trf.xlu1 }
 0x37b   : > { %v584_v9 = vpack.c.bf16 %v574_v8, %v573_v7 }
 0x37d   : > { %1587 = vmatmul.mubr.msk.bf16.gmra.mrb[8].mxu0 %vm595_vm4, %v584_v9 }
 0x37e   : > { %v575_v10 = vpop.trf.xlu1 }
 0x382   : > { %v576_v11 = vpop.trf.xlu1 }
 0x383   : > { %v585_v12 = vpack.c.bf16 %v576_v11, %v575_v10 }
 0x385   : > { %1590 = vmatprep.mubr.msk.bf16.mxu0 %vm595_vm4, %v585_v12 }
 0x386   : > { %v577_v13 = vpop.trf.xlu1 }
 0x38a   : > { %v578_v14 = vpop.trf.xlu1 }
 0x38b   : > { %v586_v15 = vpack.c.bf16 %v578_v14, %v577_v13 }
 0x38d   : > { %1591 = vmatmul.mubr.msk.bf16.gmra.mrb[12].mxu0 %vm595_vm4, %v586_v15 }
 0x430   : > { %v1580_v20 = vpop.f32.mrb[0].mxu0 }
 0x431   : > { %v658_v22 = vpop.f32.mrb[1].mxu0  ;;  %v667_v24 = vadd.f32 %v1580_v20, %v1470_v21 }
 0x432   : > { %v1581_v23 = vpop.f32.mrb[2].mxu0  ;;  %v659_v27 = vadd.f32 %v1470_v21, %v658_v22 }
 0x433   : > { %v670_v25 = vadd.f32 %v1581_v23, %v1470_v21  ;;  %v661_v26 = vpop.f32.mrb[3].mxu0  ;;  %v1098_v23 = vld [vmem:[#allocation3 + $0x60] sm:$0xff] }
 0x434   : > { %v662_v28 = vadd.f32 %v1470_v21, %v661_v26 }
 0x435   : > { %v722_v29 = vpack.c.bf16 %v670_v25, %v667_v24  ;;  %v1090_v24 = vld [vmem:[#allocation3 + $0x20] sm:$0xff] }
 0x436   : > { %v721_v30 = vpack.c.bf16 %v662_v28, %v659_v27 }
 0x438   : > { %1482 = vmatmul.mubr.msk.bf16.vlgmr.msra.gmra.mrb[0].mxu1 %vm595_vm4, %v721_v30 }
 0x439   : > { %807 = vmatprep.mubr.bf16.mxu1 %v1865_v47  ;;  %1608 = vmatpush3.bf16.msra.mxu1 %v1086_v63 }
 0x43a   : > { %1601 = vmatprep.subr.bf16.mxu1 %v1095_v0 }
 0x43d   : > { %1609 = vmatpush3.bf16.msra.mxu1 %v1087_v1 }
 0x43e   : > { %1602 = vmatprep.subr.bf16.mxu1 %v1096_v2 }
 0x440   : > { %v1584_v31 = vpop.f32.mrb[4].mxu0  ;;  %1483 = vmatmul.mubr.msk.bf16.gmra.mrb[4].mxu1 %vm595_vm4, %v722_v29  ;;  %v1099_v29 = vld [vmem:[#allocation3 + $0x68] sm:$0xff] }
 0x441   : > { %v674_v32 = vpop.f32.mrb[5].mxu0  ;;  %817 = vmatprep.mubr.bf16.mxu1 %v1865_v47  ;;  %v683_v34 = vadd.f32 %v1584_v31, %v1470_v21  ;;  %1610 = vmatpush3.bf16.msra.mxu1 %v1088_v3  ;;  %v1091_v31 = vld [vmem:[#allocation3 + $0x28] sm:$0xff] }
 0x442   : > { %v1585_v33 = vpop.f32.mrb[6].mxu0  ;;  %v675_v37 = vadd.f32 %v1470_v21, %v674_v32  ;;  %1603 = vmatprep.subr.bf16.mxu1 %v1097_v19 }
 0x443   : > { %v686_v35 = vadd.f32 %v1585_v33, %v1470_v21  ;;  %v677_v36 = vpop.f32.mrb[7].mxu0  ;;  %v1100_v33 = vld [vmem:[#allocation3 + $0x70] sm:$0xff] }
 0x444   : > { %v678_v38 = vadd.f32 %v1470_v21, %v677_v36 }
 0x445   : > { %v724_v39 = vpack.c.bf16 %v686_v35, %v683_v34  ;;  %v1092_v34 = vld [vmem:[#allocation3 + $0x30] sm:$0xff] }
 0x446   : > { %v723_v40 = vpack.c.bf16 %v678_v38, %v675_v37 }
 0x448   : > { %1484 = vmatmul.mubr.msk.bf16.gmra.mrb[8].mxu1 %vm595_vm4, %v723_v40 }
 0x449   : > { %827 = vmatprep.mubr.bf16.mxu1 %v1865_v47 }
 0x450   : > { %v1588_v41 = vpop.f32.mrb[8].mxu0  ;;  %1485 = vmatmul.mubr.msk.bf16.gmra.mrb[12].mxu1 %vm595_vm4, %v724_v39  ;;  %v1101_v39 = vld [vmem:[#allocation3 + $0x78] sm:$0xff] }
 0x451   : > { %v690_v42 = vpop.f32.mrb[9].mxu0  ;;  %837 = vmatprep.mubr.bf16.mxu1 %v1865_v47  ;;  %v699_v44 = vadd.f32 %v1588_v41, %v1470_v21  ;;  %v1093_v41 = vld [vmem:[#allocation3 + $0x38] sm:$0xff] }
 0x452   : > { %v1589_v43 = vpop.f32.mrb[10].mxu0  ;;  %v691_v48 = vadd.f32 %v1470_v21, %v690_v42 }
 0x453   : > { %v702_v45 = vadd.f32 %v1589_v43, %v1470_v21  ;;  %v693_v46 = vpop.f32.mrb[11].mxu0 }
 0x454   : > { %v694_v49 = vadd.f32 %v1470_v21, %v693_v46 }
 0x455   : > { %v726_v50 = vpack.c.bf16 %v702_v45, %v699_v44 }
 0x456   : > { %v725_v51 = vpack.c.bf16 %v694_v49, %v691_v48 }
 0x458   : > { %1486 = vmatmul.mubr.msk.bf16.gmra.mrb[16].mxu1 %vm595_vm4, %v725_v51 }
 0x459   : > { %847 = vmatprep.mubr.bf16.mxu1 %v1865_v47 }
 0x460   : > { %v1592_v52 = vpop.f32.mrb[12].mxu0  ;;  %1487 = vmatmul.mubr.msk.bf16.gmra.mrb[20].mxu1 %vm595_vm4, %v726_v50 }
 0x461   : > { %v706_v53 = vpop.f32.mrb[13].mxu0  ;;  %857 = vmatprep.mubr.bf16.mxu1 %v1865_v47  ;;  %v715_v55 = vadd.f32 %v1592_v52, %v1470_v21 }
 0x462   : > { %v1593_v54 = vpop.f32.mrb[14].mxu0  ;;  %v707_v58 = vadd.f32 %v1470_v21, %v706_v53 }
 0x463   : > { %v718_v56 = vadd.f32 %v1593_v54, %v1470_v21  ;;  %v709_v57 = vpop.f32.mrb[15].mxu0 }
 0x464   : > { %v710_v59 = vadd.f32 %v1470_v21, %v709_v57  ;;  %v1089_v21 = vld [vmem:[#allocation3 + $0x18] sm:$0xff] }
 0x465   : > { %v728_v60 = vpack.c.bf16 %v718_v56, %v715_v55  ;;  %1511 = vmatpush3.bf16.msra.mxu0 %v1089_v21  ;;  %1611 = vmatpush3.bf16.msra.mxu1 %v1089_v21 }
 0x466   : > { %v727_v61 = vpack.c.bf16 %v710_v59, %v707_v58  ;;  %1512 = vmatprep.subr.bf16.mxu0 %v1098_v23  ;;  %1604 = vmatprep.subr.bf16.mxu1 %v1098_v23 }
 0x468   : > { %1488 = vmatmul.mubr.msk.bf16.gmra.mrb[24].mxu1 %vm595_vm4, %v727_v61 }
 0x469   : > { %867 = vmatprep.mubr.bf16.mxu1 %v1865_v47  ;;  %1513 = vmatpush3.bf16.msra.mxu0 %v1090_v24 }
 0x46a   : > { %1612 = vmatpush3.bf16.msra.mxu1 %v1090_v24  ;;  %1514 = vmatprep.subr.bf16.mxu0 %v1099_v29 }
 0x46b   : > { %1605 = vmatprep.subr.bf16.mxu1 %v1099_v29 }
 0x46d   : > { %1515 = vmatpush3.bf16.msra.mxu0 %v1091_v31 }
 0x46e   : > { %1613 = vmatpush3.bf16.msra.mxu1 %v1091_v31  ;;  %1516 = vmatprep.subr.bf16.mxu0 %v1100_v33 }
 0x46f   : > { %1606 = vmatprep.subr.bf16.mxu1 %v1100_v33 }
 0x470   : > { %1489 = vmatmul.mubr.msk.bf16.gmra.mrb[28].mxu1 %vm595_vm4, %v728_v60 }
 0x471   : > { %1517 = vmatpush3.bf16.msra.mxu0 %v1092_v34 }
 0x472   : > { %1614 = vmatpush3.bf16.msra.mxu1 %v1092_v34  ;;  %1518 = vmatprep.subr.bf16.mxu0 %v1101_v39 }
 0x473   : > { %1607 = vmatprep.subr.bf16.mxu1 %v1101_v39 }
 0x475   : > { %1519 = vmatpush3.bf16.msra.mxu0 %v1093_v41 }
 0x476   : > { %1615 = vmatpush3.bf16.msra.mxu1 %v1093_v41 }
 0x50b   : > { %v2048_v47 = vpop.f32.mrb[0].mxu1 }
 0x50c   : > { %v2050_v4 = vpop.f32.mrb[1].mxu1 }
 0x50d   : > { %v2052_v5 = vpop.f32.mrb[2].mxu1  ;;  %v878_v6 = vmax.f32 %v2048_v47, %v2050_v4 }
 0x50e   : > { %v2056_v7 = vpop.f32.mrb[3].mxu1 }
 0x50f   : > { %879 = vmax.xlane.f32.xlu1 %v878_v6  ;;  %v881_v8 = vmax.f32 %v2052_v5, %v2056_v7 }
 0x511   : > { %882 = vmax.xlane.f32.xlu0 %v881_v8 }
 0x513   : > { %v2060_v9 = vpop.f32.mrb[4].mxu1 }
 0x514   : > { %v2062_v10 = vpop.f32.mrb[5].mxu1 }
 0x515   : > { %v2064_v11 = vpop.f32.mrb[6].mxu1  ;;  %v884_v12 = vmax.f32 %v2060_v9, %v2062_v10 }
 0x516   : > { %v2068_v13 = vpop.f32.mrb[7].mxu1 }
 0x517   : > { %885 = vmax.xlane.f32.xlu0 %v884_v12  ;;  %v887_v14 = vmax.f32 %v2064_v11, %v2068_v13 }
 0x51b   : > { %888 = vmax.xlane.f32.xlu0 %v887_v14  ;;  %v2072_v15 = vpop.f32.mrb[8].mxu1 }
 0x51c   : > { %v2074_v16 = vpop.f32.mrb[9].mxu1 }
 0x51d   : > { %v2076_v17 = vpop.f32.mrb[10].mxu1  ;;  %v890_v18 = vmax.f32 %v2072_v15, %v2074_v16 }
 0x51e   : > { %v2080_v20 = vpop.f32.mrb[11].mxu1 }
 0x51f   : > { %891 = vmax.xlane.f32.xlu0 %v890_v18  ;;  %v893_v22 = vmax.f32 %v2076_v17, %v2080_v20 }
 0x523   : > { %894 = vmax.xlane.f32.xlu0 %v893_v22  ;;  %v2084_v25 = vpop.f32.mrb[12].mxu1 }
 0x524   : > { %v2086_v26 = vpop.f32.mrb[13].mxu1 }
 0x525   : > { %v2088_v27 = vpop.f32.mrb[14].mxu1  ;;  %v896_v28 = vmax.f32 %v2084_v25, %v2086_v26 }
 0x526   : > { %v2092_v30 = vpop.f32.mrb[15].mxu1 }
 0x527   : > { %897 = vmax.xlane.f32.xlu0 %v896_v28  ;;  %v899_v32 = vmax.f32 %v2088_v27, %v2092_v30 }
 0x52b   : > { %900 = vmax.xlane.f32.xlu0 %v899_v32  ;;  %v2096_v35 = vpop.f32.mrb[16].mxu1 }
 0x52c   : > { %v2098_v36 = vpop.f32.mrb[17].mxu1 }
 0x52d   : > { %v2100_v37 = vpop.f32.mrb[18].mxu1  ;;  %v902_v38 = vmax.f32 %v2096_v35, %v2098_v36 }
 0x52e   : > { %v2104_v40 = vpop.f32.mrb[19].mxu1 }
 0x52f   : > { %903 = vmax.xlane.f32.xlu0 %v902_v38  ;;  %v905_v42 = vmax.f32 %v2100_v37, %v2104_v40 }
 0x533   : > { %906 = vmax.xlane.f32.xlu0 %v905_v42  ;;  %v2108_v43 = vpop.f32.mrb[20].mxu1 }
 0x534   : > { %v2110_v44 = vpop.f32.mrb[21].mxu1 }
 0x535   : > { %v2112_v45 = vpop.f32.mrb[22].mxu1  ;;  %v908_v46 = vmax.f32 %v2108_v43, %v2110_v44 }
 0x536   : > { %v2116_v48 = vpop.f32.mrb[23].mxu1 }
 0x537   : > { %909 = vmax.xlane.f32.xlu0 %v908_v46  ;;  %v911_v49 = vmax.f32 %v2112_v45, %v2116_v48 }
 0x53b   : > { %912 = vmax.xlane.f32.xlu0 %v911_v49  ;;  %v2120_v50 = vpop.f32.mrb[24].mxu1 }
 0x53c   : > { %v2122_v51 = vpop.f32.mrb[25].mxu1 }
 0x53d   : > { %v2124_v52 = vpop.f32.mrb[26].mxu1  ;;  %v914_v53 = vmax.f32 %v2120_v50, %v2122_v51 }
 0x53e   : > { %v2128_v54 = vpop.f32.mrb[27].mxu1 }
 0x53f   : > { %915 = vmax.xlane.f32.xlu0 %v914_v53  ;;  %v917_v55 = vmax.f32 %v2124_v52, %v2128_v54 }
 0x543   : > { %918 = vmax.xlane.f32.xlu0 %v917_v55  ;;  %v2132_v56 = vpop.f32.mrb[28].mxu1 }
 0x544   : > { %v2134_v57 = vpop.f32.mrb[29].mxu1 }
 0x545   : > { %v2136_v58 = vpop.f32.mrb[30].mxu1  ;;  %v920_v59 = vmax.f32 %v2132_v56, %v2134_v57 }
 0x546   : > { %v2140_v60 = vpop.f32.mrb[31].mxu1 }
 0x547   : > { %921 = vmax.xlane.f32.xlu0 %v920_v59  ;;  %v923_v61 = vmax.f32 %v2136_v58, %v2140_v60 }
 0x54b   : > { %924 = vmax.xlane.f32.xlu0 %v923_v61 }
 0x59c   : > { %v880_v62 = vpop.xlane.xlu1 %879 }
 0x59d   : > { %v926_v63 = vsub.f32 %v2048_v47, %v880_v62  ;;  %v927_v0 = vsub.f32 %v2050_v4, %v880_v62 }
 0x59e   : > { %v883_v1 = vpop.xlane.xlu0 %882 }
 0x59f   : > { %v958_v2 = vmul.f32 1.442695, %v926_v63  ;;  %v960_v3 = vmul.f32 1.442695, %v927_v0  ;;  %v928_v6 = vsub.f32 %v2052_v5, %v883_v1  ;;  %v929_v8 = vsub.f32 %v2056_v7, %v883_v1 }
 0x5a1   : > { %1700 = vpow2.f32 %v958_v2  ;;  %v962_v12 = vmul.f32 1.442695, %v928_v6  ;;  %v964_v14 = vmul.f32 1.442695, %v929_v8 }
 0x5a2   : > { %1702 = vpow2.f32 %v960_v3 }
 0x5a3   : > { %1704 = vpow2.f32 %v962_v12 }
 0x5a4   : > { %1706 = vpow2.f32 %v964_v14  ;;  %v886_v18 = vpop.xlane.xlu0 %885 }
 0x5a5   : > { %v930_v19 = vsub.f32 %v2060_v9, %v886_v18  ;;  %v931_v47 = vsub.f32 %v2062_v10, %v886_v18 }
 0x5a7   : > { %v966_v21 = vmul.f32 1.442695, %v930_v19  ;;  %v968_v4 = vmul.f32 1.442695, %v931_v47 }
 0x5a8   : > { %v889_v22 = vpop.xlane.xlu0 %888 }
 0x5a9   : > { %1708 = vpow2.f32 %v966_v21  ;;  %v932_v23 = vsub.f32 %v2064_v11, %v889_v22  ;;  %v933_v5 = vsub.f32 %v2068_v13, %v889_v22 }
 0x5aa   : > { %1710 = vpow2.f32 %v968_v4 }
 0x5ab   : > { %v1701_v7 = vpop.eup %1700  ;;  %v970_v24 = vmul.f32 1.442695, %v932_v23  ;;  %v972_v28 = vmul.f32 1.442695, %v933_v5 }
 0x5ac   : > { %v1703_v29 = vpop.eup %1702  ;;  %v892_v31 = vpop.xlane.xlu0 %891 }
 0x5ad   : > { %v1705_v32 = vpop.eup %1704  ;;  %1712 = vpow2.f32 %v970_v24  ;;  %v934_v9 = vsub.f32 %v2072_v15, %v892_v31  ;;  %v935_v10 = vsub.f32 %v2074_v16, %v892_v31  ;;  %v1022_v33 = vadd.f32 %v1703_v29, %v1701_v7 }
 0x5ae   : > { %v1707_v34 = vpop.eup %1706  ;;  %1714 = vpow2.f32 %v972_v28  ;;  %v1070_v38 = vpack.c.bf16 %v1705_v32, %v1701_v7 }
 0x5af   : > { %v974_v39 = vmul.f32 1.442695, %v934_v9  ;;  %v976_v11 = vmul.f32 1.442695, %v935_v10  ;;  %1023 = vadd.xlane.f32.xlu0 %v1022_v33  ;;  %v1071_v13 = vpack.c.bf16 %v1707_v34, %v1703_v29  ;;  %v1025_v41 = vadd.f32 %v1707_v34, %v1705_v32 }
 0x5b0   : > { %v895_v42 = vpop.xlane.xlu0 %894 }
 0x5b1   : > { %1716 = vpow2.f32 %v974_v39  ;;  %v936_v46 = vsub.f32 %v2076_v17, %v895_v42  ;;  %v937_v49 = vsub.f32 %v2080_v20, %v895_v42  ;;  %1134 = vmatprep.mubr.bf16.mxu0 %v1071_v13 }
 0x5b2   : > { %1718 = vpow2.f32 %v976_v11  ;;  %1135 = vmatmul.mubr.bf16.vlgmr.msra.gmra.mrb[16].mxu0 %v1070_v38 }
 0x5b3   : > { %v1709_v15 = vpop.eup %1708  ;;  %v978_v16 = vmul.f32 1.442695, %v936_v46  ;;  %v980_v53 = vmul.f32 1.442695, %v937_v49  ;;  %1026 = vadd.xlane.f32.xlu0 %v1025_v41 }
 0x5b4   : > { %v1711_v55 = vpop.eup %1710  ;;  %v898_v59 = vpop.xlane.xlu0 %897 }
 0x5b5   : > { %1720 = vpow2.f32 %v978_v16  ;;  %v938_v61 = vsub.f32 %v2084_v25, %v898_v59  ;;  %v939_v62 = vsub.f32 %v2086_v26, %v898_v59  ;;  %v1028_v63 = vadd.f32 %v1711_v55, %v1709_v15 }
 0x5b6   : > { %1722 = vpow2.f32 %v980_v53 }
 0x5b7   : > { %v1713_v0 = vpop.eup %1712  ;;  %v982_v17 = vmul.f32 1.442695, %v938_v61  ;;  %v984_v1 = vmul.f32 1.442695, %v939_v62  ;;  %1029 = vadd.xlane.f32.xlu1 %v1028_v63 }
 0x5b8   : > { %v1715_v20 = vpop.eup %1714  ;;  %v901_v2 = vpop.xlane.xlu0 %900  ;;  %v1072_v3 = vpack.c.bf16 %v1713_v0, %v1709_v15 }
 0x5b9   : > { %1724 = vpow2.f32 %v982_v17  ;;  %v940_v6 = vsub.f32 %v2088_v27, %v901_v2  ;;  %v941_v8 = vsub.f32 %v2092_v30, %v901_v2  ;;  %v1073_v12 = vpack.c.bf16 %v1715_v20, %v1711_v55 }
 0x5ba   : > { %1726 = vpow2.f32 %v984_v1  ;;  %v1031_v14 = vadd.f32 %v1715_v20, %v1713_v0 }
 0x5bb   : > { %v1717_v25 = vpop.eup %1716  ;;  %v986_v18 = vmul.f32 1.442695, %v940_v6  ;;  %v988_v26 = vmul.f32 1.442695, %v941_v8  ;;  %1142 = vmatprep.mubr.bf16.mxu0 %v1073_v12 }
 0x5bc   : > { %v1719_v19 = vpop.eup %1718  ;;  %1032 = vadd.xlane.f32.xlu0 %v1031_v14  ;;  %1143 = vmatmul.mubr.bf16.gmra.mrb[20].mxu0 %v1072_v3  ;;  %v904_v47 = vpop.xlane.xlu0 %903 }
 0x5bd   : > { %1728 = vpow2.f32 %v986_v18  ;;  %v942_v21 = vsub.f32 %v2096_v35, %v904_v47  ;;  %v943_v4 = vsub.f32 %v2098_v36, %v904_v47  ;;  %v1034_v22 = vadd.f32 %v1719_v19, %v1717_v25 }
 0x5be   : > { %1730 = vpow2.f32 %v988_v26 }
 0x5bf   : > { %v1721_v27 = vpop.eup %1720  ;;  %v990_v30 = vmul.f32 1.442695, %v942_v21  ;;  %v992_v23 = vmul.f32 1.442695, %v943_v4  ;;  %1035 = vadd.xlane.f32.xlu1 %v1034_v22 }
 0x5c0   : > { %v1723_v5 = vpop.eup %1722  ;;  %v907_v7 = vpop.xlane.xlu0 %906  ;;  %v1074_v24 = vpack.c.bf16 %v1721_v27, %v1717_v25 }
 0x5c1   : > { %1732 = vpow2.f32 %v990_v30  ;;  %v944_v28 = vsub.f32 %v2100_v37, %v907_v7  ;;  %v945_v29 = vsub.f32 %v2104_v40, %v907_v7  ;;  %v1075_v31 = vpack.c.bf16 %v1723_v5, %v1719_v19 }
 0x5c2   : > { %1734 = vpow2.f32 %v992_v23  ;;  %v1037_v32 = vadd.f32 %v1723_v5, %v1721_v27 }
 0x5c3   : > { %v1725_v35 = vpop.eup %1724  ;;  %v994_v9 = vmul.f32 1.442695, %v944_v28  ;;  %v996_v36 = vmul.f32 1.442695, %v945_v29  ;;  %1150 = vmatprep.mubr.bf16.mxu0 %v1075_v31 }
 0x5c4   : > { %v1727_v10 = vpop.eup %1726  ;;  %1038 = vadd.xlane.f32.xlu0 %v1037_v32  ;;  %1151 = vmatmul.mubr.bf16.gmra.mrb[24].mxu0 %v1074_v24  ;;  %v910_v33 = vpop.xlane.xlu0 %909 }
 0x5c5   : > { %1736 = vpow2.f32 %v994_v9  ;;  %v946_v34 = vsub.f32 %v2108_v43, %v910_v33  ;;  %v947_v38 = vsub.f32 %v2110_v44, %v910_v33  ;;  %v1040_v39 = vadd.f32 %v1727_v10, %v1725_v35 }
 0x5c6   : > { %1738 = vpow2.f32 %v996_v36 }
 0x5c7   : > { %v1729_v37 = vpop.eup %1728  ;;  %v998_v40 = vmul.f32 1.442695, %v946_v34  ;;  %v1000_v11 = vmul.f32 1.442695, %v947_v38  ;;  %1041 = vadd.xlane.f32.xlu1 %v1040_v39 }
 0x5c8   : > { %v1731_v13 = vpop.eup %1730  ;;  %v913_v41 = vpop.xlane.xlu0 %912  ;;  %v1076_v42 = vpack.c.bf16 %v1729_v37, %v1725_v35 }
 0x5c9   : > { %1740 = vpow2.f32 %v998_v40  ;;  %v948_v46 = vsub.f32 %v2112_v45, %v913_v41  ;;  %v949_v49 = vsub.f32 %v2116_v48, %v913_v41  ;;  %v1077_v15 = vpack.c.bf16 %v1731_v13, %v1727_v10 }
 0x5ca   : > { %1742 = vpow2.f32 %v1000_v11  ;;  %v1043_v16 = vadd.f32 %v1731_v13, %v1729_v37 }
 0x5cb   : > { %v1733_v43 = vpop.eup %1732  ;;  %v1002_v53 = vmul.f32 1.442695, %v948_v46  ;;  %v1004_v44 = vmul.f32 1.442695, %v949_v49  ;;  %1158 = vmatprep.mubr.bf16.mxu0 %v1077_v15 }
 0x5cc   : > { %v1735_v55 = vpop.eup %1734  ;;  %1044 = vadd.xlane.f32.xlu0 %v1043_v16  ;;  %1159 = vmatmul.mubr.bf16.gmra.mrb[28].mxu0 %v1076_v42  ;;  %v916_v59 = vpop.xlane.xlu0 %915 }
 0x5cd   : > { %1744 = vpow2.f32 %v1002_v53  ;;  %v950_v61 = vsub.f32 %v2120_v50, %v916_v59  ;;  %v951_v62 = vsub.f32 %v2122_v51, %v916_v59  ;;  %v1046_v63 = vadd.f32 %v1735_v55, %v1733_v43 }
 0x5ce   : > { %1746 = vpow2.f32 %v1004_v44 }
 0x5cf   : > { %v1737_v45 = vpop.eup %1736  ;;  %v1006_v48 = vmul.f32 1.442695, %v950_v61  ;;  %v1008_v0 = vmul.f32 1.442695, %v951_v62  ;;  %1047 = vadd.xlane.f32.xlu1 %v1046_v63 }
 0x5d0   : > { %v1739_v17 = vpop.eup %1738  ;;  %v919_v1 = vpop.xlane.xlu0 %918  ;;  %v1078_v20 = vpack.c.bf16 %v1737_v45, %v1733_v43 }
 0x5d1   : > { %1748 = vpow2.f32 %v1006_v48  ;;  %v952_v2 = vsub.f32 %v2124_v52, %v919_v1  ;;  %v953_v3 = vsub.f32 %v2128_v54, %v919_v1  ;;  %v1079_v6 = vpack.c.bf16 %v1739_v17, %v1735_v55 }
 0x5d2   : > { %1750 = vpow2.f32 %v1008_v0  ;;  %v1049_v8 = vadd.f32 %v1739_v17, %v1737_v45  ;;  %v1867_v0 = vmov 0.0  }
 0x5d3   : > { %v1741_v50 = vpop.eup %1740  ;;  %v1010_v12 = vmul.f32 1.442695, %v952_v2  ;;  %v1012_v51 = vmul.f32 1.442695, %v953_v3  ;;  %1166 = vmatprep.mubr.bf16.mxu0 %v1079_v6  ;;  %1594 = vmatprep.subr.bf16.mxu1 %v1867_v0  ;;  %v1312_v3 = vld [vmem:[%s2214_s7] sm:$0xff] }
 0x5d4   : > { %v1743_v14 = vpop.eup %1742  ;;  %1050 = vadd.xlane.f32.xlu0 %v1049_v8  ;;  %1167 = vmatmul.mubr.bf16.gmra.mrb[32].mxu0 %v1078_v20  ;;  %v922_v25 = vpop.xlane.xlu0 %921 }
 0x5d5   : > { %1752 = vpow2.f32 %v1010_v12  ;;  %v954_v18 = vsub.f32 %v2132_v56, %v922_v25  ;;  %v955_v26 = vsub.f32 %v2134_v57, %v922_v25  ;;  %v1052_v19 = vadd.f32 %v1743_v14, %v1741_v50 }
 0x5d6   : > { %1754 = vpow2.f32 %v1012_v51 }
 0x5d7   : > { %v1745_v52 = vpop.eup %1744  ;;  %v1014_v54 = vmul.f32 1.442695, %v954_v18  ;;  %v1016_v47 = vmul.f32 1.442695, %v955_v26  ;;  %1053 = vadd.xlane.f32.xlu1 %v1052_v19 }
 0x5d8   : > { %v1747_v21 = vpop.eup %1746  ;;  %v925_v4 = vpop.xlane.xlu0 %924  ;;  %v1080_v22 = vpack.c.bf16 %v1745_v52, %v1741_v50 }
 0x5d9   : > { %1756 = vpow2.f32 %v1014_v54  ;;  %v956_v27 = vsub.f32 %v2136_v58, %v925_v4  ;;  %v957_v30 = vsub.f32 %v2140_v60, %v925_v4  ;;  %v1081_v23 = vpack.c.bf16 %v1747_v21, %v1743_v14 }
 0x5da   : > { %1758 = vpow2.f32 %v1016_v47  ;;  %v1055_v5 = vadd.f32 %v1747_v21, %v1745_v52 }
 0x5db   : > { %v1749_v56 = vpop.eup %1748  ;;  %v1018_v7 = vmul.f32 1.442695, %v956_v27  ;;  %v1020_v57 = vmul.f32 1.442695, %v957_v30  ;;  %1174 = vmatprep.mubr.bf16.mxu0 %v1081_v23 }
 0x5dc   : > { %v1751_v24 = vpop.eup %1750  ;;  %1056 = vadd.xlane.f32.xlu0 %v1055_v5  ;;  %1175 = vmatmul.mubr.bf16.gmra.mrb[36].mxu0 %v1080_v22 }
 0x5dd   : > { %1760 = vpow2.f32 %v1018_v7  ;;  %v1058_v28 = vadd.f32 %v1751_v24, %v1749_v56 }
 0x5de   : > { %1762 = vpow2.f32 %v1020_v57 }
 0x5df   : > { %v1753_v29 = vpop.eup %1752  ;;  %1059 = vadd.xlane.f32.xlu1 %v1058_v28 }
 0x5e0   : > { %v1755_v31 = vpop.eup %1754  ;;  %v1082_v32 = vpack.c.bf16 %v1753_v29, %v1749_v56 }
 0x5e1   : > { %v1083_v58 = vpack.c.bf16 %v1755_v31, %v1751_v24  ;;  %v1061_v35 = vadd.f32 %v1755_v31, %v1753_v29 }
 0x5e3   : > { %v1757_v60 = vpop.eup %1756  ;;  %1182 = vmatprep.mubr.bf16.mxu0 %v1083_v58  ;;  %1062 = vadd.xlane.f32.xlu0 %v1061_v35 }
 0x5e4   : > { %v1759_v9 = vpop.eup %1758  ;;  %1183 = vmatmul.mubr.bf16.gmra.mrb[40].mxu0 %v1082_v32 }
 0x5e5   : > { %v1064_v36 = vadd.f32 %v1759_v9, %v1757_v60 }
 0x5e7   : > { %v1761_v10 = vpop.eup %1760  ;;  %1065 = vadd.xlane.f32.xlu1 %v1064_v36 }
 0x5e8   : > { %v1763_v33 = vpop.eup %1762  ;;  %v1084_v34 = vpack.c.bf16 %v1761_v10, %v1757_v60 }
 0x5e9   : > { %v1085_v38 = vpack.c.bf16 %v1763_v33, %v1759_v9  ;;  %v1067_v39 = vadd.f32 %v1763_v33, %v1761_v10 }
 0x5eb   : > { %1190 = vmatprep.mubr.bf16.mxu1 %v1085_v38  ;;  %1068 = vadd.xlane.f32.xlu0 %v1067_v39 }
 0x5ec   : > { %1191 = vmatmul.mubr.bf16.vlgmr.msra.gmra.mrb[32].mxu1 %v1084_v34 }
 0x5ed   : > { %1596 = vmatprep.mubr.msk.bf16.mxu1 %vm1868_vm5, %v1867_v0 }
 0x601   : > { %1315 = vperm.xlu0 %1697, %v1312_v3  }
 0x63c   : > { %v1024_v37 = vpop.xlane.xlu0 %1023 }
 0x63d   : > { %1764 = vrcp.f32 %v1024_v37 }
 0x640   : > { %v1027_v40 = vpop.xlane.xlu0 %1026 }
 0x641   : > { %1766 = vrcp.f32 %v1027_v40 }
 0x644   : > { %v1030_v11 = vpop.xlane.xlu1 %1029 }
 0x645   : > { %1768 = vrcp.f32 %v1030_v11 }
 0x647   : > { %v1765_v49 = vpop.eup %1764 }
 0x649   : > { %v1033_v16 = vpop.xlane.xlu0 %1032 }
 0x64a   : > { %1770 = vrcp.f32 %v1033_v16 }
 0x64b   : > { %v1767_v44 = vpop.eup %1766 }
 0x64c   : > { %v1036_v55 = vpop.xlane.xlu1 %1035 }
 0x64d   : > { %1772 = vrcp.f32 %v1036_v55 }
 0x64f   : > { %v1769_v17 = vpop.eup %1768 }
 0x651   : > { %v1039_v63 = vpop.xlane.xlu0 %1038 }
 0x652   : > { %1774 = vrcp.f32 %v1039_v63 }
 0x654   : > { %v1042_v6 = vpop.xlane.xlu1 %1041  ;;  %v1771_v8 = vpop.eup %1770 }
 0x655   : > { %1776 = vrcp.f32 %v1042_v6 }
 0x657   : > { %v1773_v26 = vpop.eup %1772 }
 0x659   : > { %v1045_v14 = vpop.xlane.xlu0 %1044 }
 0x65a   : > { %1778 = vrcp.f32 %v1045_v14 }
 0x65c   : > { %v1048_v47 = vpop.xlane.xlu1 %1047  ;;  %v1775_v21 = vpop.eup %1774 }
 0x65d   : > { %1780 = vrcp.f32 %v1048_v47 }
 0x65f   : > { %v1777_v56 = vpop.eup %1776 }
 0x661   : > { %v1051_v30 = vpop.xlane.xlu0 %1050 }
 0x662   : > { %1782 = vrcp.f32 %v1051_v30 }
 0x664   : > { %v1054_v28 = vpop.xlane.xlu1 %1053  ;;  %v1779_v29 = vpop.eup %1778 }
 0x665   : > { %1784 = vrcp.f32 %v1054_v28 }
 0x667   : > { %v1781_v36 = vpop.eup %1780 }
 0x669   : > { %v1057_v35 = vpop.xlane.xlu0 %1056 }
 0x66a   : > { %1786 = vrcp.f32 %v1057_v35 }
 0x66c   : > { %v1060_v38 = vpop.xlane.xlu1 %1059  ;;  %v1783_v39 = vpop.eup %1782 }
 0x66d   : > { %1788 = vrcp.f32 %v1060_v38 }
 0x685   : > { %v1520_v13 = vpop.f32.mrb[16].mxu0 }
 0x686   : > { %v1521_v41 = vpop.f32.mrb[17].mxu0 }
 0x687   : > { %v1522_v42 = vadd.f32 %v1521_v41, %v1520_v13  ;;  %v1523_v46 = vpop.f32.mrb[18].mxu0  ;;  %v1063_v13 = vpop.xlane.xlu0 %1062 }
 0x688   : > { %v1524_v15 = vpop.f32.mrb[19].mxu0  ;;  %1790 = vrcp.f32 %v1063_v13 }
 0x689   : > { %v1215_v43 = vmul.f32 %v1765_v49, %v1522_v42  ;;  %v1525_v53 = vadd.f32 %v1524_v15, %v1523_v46  ;;  %v1785_v46 = vpop.eup %1784 }
 0x68b   : > { %1231 = vxpose.xlu1.b32.start [1/16] (narrow) %v1215_v43, 8  ;;  %v1216_v59 = vmul.f32 %v1767_v44, %v1525_v53  ;;  %v1066_v43 = vpop.xlane.xlu1 %1065  ;;  %v1787_v53 = vpop.eup %1786 }
 0x68c   : > { %1792 = vrcp.f32 %v1066_v43 }
 0x68f   : > { %v1526_v61 = vpop.f32.mrb[20].mxu0  ;;  %1232 = vxpose.xlu1.b32.cont [2/16] (narrow) %v1216_v59, 8 }
 0x690   : > { %v1527_v62 = vpop.f32.mrb[21].mxu0 }
 0x691   : > { %v1528_v45 = vadd.f32 %v1527_v62, %v1526_v61  ;;  %v1529_v48 = vpop.f32.mrb[22].mxu0  ;;  %v1069_v61 = vpop.xlane.xlu0 %1068 }
 0x692   : > { %v1530_v1 = vpop.f32.mrb[23].mxu0  ;;  %1794 = vrcp.f32 %v1069_v61 }
 0x693   : > { %v1217_v20 = vmul.f32 %v1769_v17, %v1528_v45  ;;  %v1531_v2 = vadd.f32 %v1530_v1, %v1529_v48  ;;  %v1789_v45 = vpop.eup %1788 }
 0x694   : > { %v1791_v1 = vpop.eup %1790 }
 0x695   : > { %1233 = vxpose.xlu1.b32.cont [3/16] (narrow) %v1217_v20, 8  ;;  %v1218_v50 = vmul.f32 %v1771_v8, %v1531_v2 }
 0x697   : > { %v1532_v12 = vpop.f32.mrb[24].mxu0 }
 0x698   : > { %v1533_v51 = vpop.f32.mrb[25].mxu0 }
 0x699   : > { %v1534_v25 = vadd.f32 %v1533_v51, %v1532_v12  ;;  %v1535_v18 = vpop.f32.mrb[26].mxu0  ;;  %1234 = vxpose.xlu1.b32.cont [4/16] (narrow) %v1218_v50, 8  ;;  %v1793_v50 = vpop.eup %1792 }
 0x69a   : > { %v1536_v19 = vpop.f32.mrb[27].mxu0 }
 0x69b   : > { %v1219_v52 = vmul.f32 %v1773_v26, %v1534_v25  ;;  %v1537_v54 = vadd.f32 %v1536_v19, %v1535_v18 }
 0x69c   : > { %v1795_v25 = vpop.eup %1794 }
 0x69d   : > { %1235 = vxpose.xlu1.b32.cont [5/16] (narrow) %v1219_v52, 8  ;;  %v1220_v4 = vmul.f32 %v1775_v21, %v1537_v54  ;;  %v1264_v54 = vld [vmem:[%s2213_s6] sm:$0xf]  ;;  %v1316_v21 = vpop.permute.xlu0 %1315 }
 0x69f   : > { %v1538_v22 = vpop.f32.mrb[28].mxu0 }
 0x6a0   : > { %v1539_v27 = vpop.f32.mrb[29].mxu0 }
 0x6a1   : > { %v1540_v23 = vadd.f32 %v1539_v27, %v1538_v22  ;;  %v1541_v5 = vpop.f32.mrb[30].mxu0  ;;  %1236 = vxpose.xlu1.b32.cont [6/16] (narrow) %v1220_v4, 8  ;;  %v1796_v4 = vld [vmem:[%s2012_s16] sm:$0xff] }
 0x6a2   : > { %v1542_v7 = vpop.f32.mrb[31].mxu0 }
 0x6a3   : > { %v1221_v57 = vmul.f32 %v1777_v56, %v1540_v23  ;;  %v1543_v24 = vadd.f32 %v1542_v7, %v1541_v5 }
 0x6a5   : > { %1237 = vxpose.xlu1.b32.cont [7/16] (narrow) %v1221_v57, 8  ;;  %v1222_v31 = vmul.f32 %v1779_v29, %v1543_v24 }
 0x6a7   : > { %v1544_v32 = vpop.f32.mrb[32].mxu0 }
 0x6a8   : > { %v1545_v58 = vpop.f32.mrb[33].mxu0 }
 0x6a9   : > { %v1546_v60 = vadd.f32 %v1545_v58, %v1544_v32  ;;  %v1547_v9 = vpop.f32.mrb[34].mxu0  ;;  %1238 = vxpose.xlu1.b32.cont [8/16] (narrow) %v1222_v31, 8 }
 0x6aa   : > { %v1548_v10 = vpop.f32.mrb[35].mxu0 }
 0x6ab   : > { %v1223_v33 = vmul.f32 %v1781_v36, %v1546_v60  ;;  %v1549_v34 = vadd.f32 %v1548_v10, %v1547_v9 }
 0x6ad   : > { %1239 = vxpose.xlu1.b32.cont [9/16] (narrow) %v1223_v33, 8  ;;  %v1224_v37 = vmul.f32 %v1783_v39, %v1549_v34 }
 0x6af   : > { %v1550_v40 = vpop.f32.mrb[36].mxu0 }
 0x6b0   : > { %v1551_v11 = vpop.f32.mrb[37].mxu0 }
 0x6b1   : > { %v1552_v41 = vadd.f32 %v1551_v11, %v1550_v40  ;;  %v1553_v42 = vpop.f32.mrb[38].mxu0  ;;  %1240 = vxpose.xlu1.b32.cont [10/16] (narrow) %v1224_v37, 8 }
 0x6b2   : > { %v1554_v49 = vpop.f32.mrb[39].mxu0 }
 0x6b3   : > { %v1225_v15 = vmul.f32 %v1785_v46, %v1552_v41  ;;  %v1555_v16 = vadd.f32 %v1554_v49, %v1553_v42 }
 0x6b5   : > { %1241 = vxpose.xlu1.b32.cont [11/16] (narrow) %v1225_v15, 8  ;;  %v1226_v44 = vmul.f32 %v1787_v53, %v1555_v16 }
 0x6b7   : > { %v1556_v55 = vpop.f32.mrb[40].mxu0 }
 0x6b8   : > { %v1557_v59 = vpop.f32.mrb[41].mxu0 }
 0x6b9   : > { %v1558_v62 = vadd.f32 %v1557_v59, %v1556_v55  ;;  %v1559_v63 = vpop.f32.mrb[42].mxu0  ;;  %1242 = vxpose.xlu1.b32.cont [12/16] (narrow) %v1226_v44, 8 }
 0x6ba   : > { %v1560_v48 = vpop.f32.mrb[43].mxu0 }
 0x6bb   : > { %v1227_v0 = vmul.f32 %v1789_v45, %v1558_v62  ;;  %v1561_v17 = vadd.f32 %v1560_v48, %v1559_v63 }
 0x6bd   : > { %1243 = vxpose.xlu1.b32.cont [13/16] (narrow) %v1227_v0, 8  ;;  %v1228_v20 = vmul.f32 %v1791_v1, %v1561_v17 }
 0x6bf   : > { %v1562_v2 = vpop.f32.mrb[32].mxu1 }
 0x6c0   : > { %v1563_v3 = vpop.f32.mrb[33].mxu1 }
 0x6c1   : > { %v1564_v6 = vadd.f32 %v1563_v3, %v1562_v2  ;;  %v1565_v8 = vpop.f32.mrb[34].mxu1  ;;  %1244 = vxpose.xlu1.b32.cont [14/16] (narrow) %v1228_v20, 8 }
 0x6c2   : > { %v1566_v12 = vpop.f32.mrb[35].mxu1 }
 0x6c3   : > { %v1229_v51 = vmul.f32 %v1793_v50, %v1564_v6  ;;  %v1567_v14 = vadd.f32 %v1566_v12, %v1565_v8 }
 0x6c5   : > { %1245 = vxpose.xlu1.b32.cont [15/16] (narrow) %v1229_v51, 8  ;;  %v1230_v18 = vmul.f32 %v1795_v25, %v1567_v14 }
 0x6c9   : > { %1246 = vxpose.xlu1.b32.end [16/16] (narrow) %v1230_v18, 8 }
 0x70d   : > { %v1247_v26 = vpop.trf.xlu1 }
 0x70e   : > { %v1263_v19 = vpack.c.bf16 %v1247_v26, %v1247_v26 }
 0x710   : > { %v1269_v52 = vsel %vm620_vm3, %v1263_v19, 0 }
 0x711   : > { %1595 = vmatpush3.bf16.msra.mxu1 %v1269_v52 }
 0x714   : > { %1597 = vmatmul.mubr.msk.bf16.vlgmr.msra.gmra.mrb[36].mxu1 %vm595_vm4, %v1264_v54 }
 0x7e7   : > { %v1305_v47 = vpop.f32.mrb[36].mxu1 }
 0x7e8   : > { %v1311_v22 = vadd.f32 %v1796_v4, %v1305_v47  ;;  %v1598_v27 = vpop.f32.mrb[37].mxu1 }
 0x7e9   : > { %v1308_v30 = vpop.f32.mrb[38].mxu1 }
 0x7ea   : > { %v1599_v23 = vpop.f32.mrb[39].mxu1  ;;  %v1318_v5 = vadd.f32 %v1316_v21, %v1311_v22 }
 0x7ec   : > { %1319 = vst [vmem:[%s1972_s29] sm:$0xff] %v1318_v5 }
 0x7ed PF: > { %s18_s11 = sadd.s32 1, %s1855_s11   ;;  %s2219_s23 = sld [smem:[#allocation4_spill]] }
 0x7ee   : > { %p15_p11 = scmp.ge.s32.totalorder %s18_s11, 14   ;;  %s2220_s24 = sld [smem:[#allocation5_spill]] }
 0x7ef   : > { %s2221_s25 = sld [smem:[#allocation6_spill]]  ;;  %s2222_s27 = smov %s1843_s30 }
 0x7f0   : > { %s2223_s28 = smov %s1847_s9  ;;  %s2224_s29 = smov %s1851_s10 }
 0x7f1   :  { %17 = sbr.rel (!%p15_p11) target bundleno = 4 (0x4), region = 111 }
 0x7f3   : > { %s2225_s30 = smov %s2219_s23 }
 0x7f4   : > { %s2226_s9 = smov %s2220_s24 }
 0x7f5   : > { %s2227_s10 = smov %s2221_s25 }

</bundles_post_ra>
